<compile_context>
chip_gen: v5e
topology: v5e:2x2
jax: 0.10.0
libtpu: 0.0.40
codegen_flags: <defaults>
</compile_context>

<pallas_src>
import jax
import jax.numpy as jnp
from jax.experimental import pallas as pl
from jax.experimental.pallas import tpu as pltpu

LANE = 128
SUBLANE = 8


def _round_up(x, m):
    return ((x + m - 1) // m) * m


def mynet_hot_kernel(x_ref,
                     w1_ref, b1_ref,
                     w2_ref, b2_ref,
                     w3_ref, b3_ref,
                     w4_ref, b4_ref,
                     w5_ref, b5_ref,
                     out_ref):
    """Fused forward for one batch tile. Dropout(p=0) is a no-op."""

    def layer(h, w_ref, b_ref, relu):
        # bf16 MXU inputs, f32 accumulation; bias/ReLU in f32 on the VPU.
        # (astype is a trace-time no-op when h is already bf16, e.g. layer 1.)
        y = jnp.dot(h.astype(jnp.bfloat16), w_ref[...],
                    preferred_element_type=jnp.float32) + b_ref[...]
        if relu:
            y = jnp.maximum(y, 0.0)
        return y

    h = x_ref[...]                         # bf16 input tile
    h = layer(h, w1_ref, b1_ref, True)     # n_in  -> 1000 (pad 1024), ReLU
    h = layer(h, w2_ref, b2_ref, True)     # 1000  -> 500  (pad 512),  ReLU
    h = layer(h, w3_ref, b3_ref, True)     # 500   -> 100  (pad 128),  ReLU
    h = layer(h, w4_ref, b4_ref, True)     # 100   -> 100  (pad 128),  ReLU
    y = layer(h, w5_ref, b5_ref, False)    # 100   -> n_out (pad 128)
    out_ref[...] = y.astype(out_ref.dtype)


def prepare_params(params):
    """One-time weight prep: pad feature dims to multiples of 128 and cast
    weights to bf16 (hoisted out of the per-call forward path)."""
    padded = []
    for w, b in params:
        k, n = w.shape
        kp, npad = _round_up(k, LANE), _round_up(n, LANE)
        w_p = jnp.pad(w, ((0, kp - k), (0, npad - n))).astype(jnp.bfloat16)
        b_p = jnp.pad(b, (0, npad - n)).reshape(1, -1).astype(jnp.float32)
        padded.append((w_p, b_p))
    n_out = params[-1][0].shape[1]
    return tuple(padded), n_out


def _choose_tile(batch, tm_cap):
    """Balanced batch tiles: minimize padded rows, cap tile at tm_cap, and
    prefer >= 2 grid steps (v7x has 2 TensorCores) once batch >= 16."""
    max_tile = min(_round_up(tm_cap, SUBLANE), _round_up(batch, SUBLANE))
    if batch >= 2 * SUBLANE:
        max_tile = min(max_tile, _round_up(pl.cdiv(batch, 2), SUBLANE))
    n_tiles = pl.cdiv(batch, max_tile)
    tm_eff = _round_up(pl.cdiv(batch, n_tiles), SUBLANE)
    return tm_eff, tm_eff * n_tiles


def mynet_hot_forward(x, prepared, *, tm=512):
    """x: [batch, n_in] f32. prepared: output of prepare_params()."""
    padded_params, n_out = prepared
    batch, n_in = x.shape
    in_pad0 = padded_params[0][0].shape[0]
    out_pad = padded_params[-1][0].shape[1]

    tm_eff, b_pad = _choose_tile(batch, tm)

    # bf16 activation input: halves x DMA bytes; zero-padding is exact.
    x_p = jnp.pad(x.astype(jnp.bfloat16),
                  ((0, b_pad - batch), (0, in_pad0 - n_in)))

    flat_inputs = [x_p]
    in_specs = [pl.BlockSpec((tm_eff, in_pad0), lambda i: (i, 0))]

    flops = 0
    weight_bytes = 0
    for w_p, b_p in padded_params:
        flat_inputs += [w_p, b_p]
        # Weights/biases resident in VMEM across all batch tiles.
        in_specs += [pl.BlockSpec(w_p.shape, lambda i: (0, 0)),
                     pl.BlockSpec(b_p.shape, lambda i: (0, 0))]
        flops += 2 * b_pad * w_p.shape[0] * w_p.shape[1]
        weight_bytes += w_p.size * 2 + b_p.size * 4

    bytes_accessed = weight_bytes + x_p.size * 2 + b_pad * out_pad * 4

    out_padded = pl.pallas_call(
        mynet_hot_kernel,
        out_shape=jax.ShapeDtypeStruct((b_pad, out_pad), jnp.float32),
        grid=(b_pad // tm_eff,),
        in_specs=in_specs,
        out_specs=pl.BlockSpec((tm_eff, out_pad), lambda i: (i, 0)),
        compiler_params=pltpu.CompilerParams(
            dimension_semantics=("parallel",),
            vmem_limit_bytes=48 * 1024 * 1024),
        cost_estimate=pl.CostEstimate(
            flops=flops, transcendentals=0, bytes_accessed=bytes_accessed),
    )(*flat_inputs)

    return out_padded[:batch, :n_out]


def init_params(key, n_in, n_out):
    """PyTorch-Linear-style init (uniform +/- 1/sqrt(fan_in)).
    Weights stored pre-transposed: [in_features, out_features]."""
    dims = [(n_in, 1000), (1000, 500), (500, 100), (100, 100), (100, n_out)]
    params = []
    for fan_in, fan_out in dims:
        key, kw, kb = jax.random.split(key, 3)
        bound = 1.0 / float(fan_in) ** 0.5
        w_t = jax.random.uniform(kw, (fan_in, fan_out), jnp.float32, -bound, bound)
        b = jax.random.uniform(kb, (fan_out,), jnp.float32, -bound, bound)
        params.append((w_t, b))
    return params


def reference_forward(x, params):
    """Pure-JAX reference mirroring the kernel math (bf16 dot inputs, f32 acc)."""
    h = x.astype(jnp.bfloat16)
    for i, (w, b) in enumerate(params):
        h = jnp.dot(h.astype(jnp.bfloat16), w.astype(jnp.bfloat16),
                    preferred_element_type=jnp.float32) + b
        if i < len(params) - 1:
            h = jnp.maximum(h, 0.0)
    return h


if __name__ == "__main__":
    n_in, n_out, batch = 32, 10, 8

    key = jax.random.PRNGKey(0)
    key, kx = jax.random.split(key)
    x = jax.random.normal(kx, (batch, n_in), jnp.float32)
    params = init_params(key, n_in, n_out)

    prepared = prepare_params(params)      # one-time pad/cast (hoisted)
    out = mynet_hot_forward(x, prepared)
    out = jax.block_until_ready(out)

    ref = reference_forward(x, params)
    assert out.shape == (batch, n_out)
    assert jnp.allclose(out, ref, atol=1e-3, rtol=1e-3), \
        "mismatch vs pure-JAX reference"

    print("KERNEL_OK")
</pallas_src>

<mosaic_0001>
module attributes {stable_mosaic.version = 11 : i64} {
  func.func @mynet_hot_kernel(%arg0: i32, %arg1: memref<8x128xbf16, #tpu.memory_space<vmem>>, %arg2: memref<128x1024xbf16, #tpu.memory_space<vmem>>, %arg3: memref<1x1024xf32, #tpu.memory_space<vmem>>, %arg4: memref<1024x512xbf16, #tpu.memory_space<vmem>>, %arg5: memref<1x512xf32, #tpu.memory_space<vmem>>, %arg6: memref<512x128xbf16, #tpu.memory_space<vmem>>, %arg7: memref<1x128xf32, #tpu.memory_space<vmem>>, %arg8: memref<128x128xbf16, #tpu.memory_space<vmem>>, %arg9: memref<1x128xf32, #tpu.memory_space<vmem>>, %arg10: memref<128x128xbf16, #tpu.memory_space<vmem>>, %arg11: memref<1x128xf32, #tpu.memory_space<vmem>>, %arg12: memref<8x128xf32, #tpu.memory_space<vmem>>) attributes {dimension_semantics = [#tpu.dimension_semantics<parallel>], iteration_bounds = array<i64: 1>, scalar_prefetch = 0 : i64, scratch_operands = 0 : i64, tpu.core_type = #tpu.core_type<tc>, window_params = [{transform_indices = @transform_0, window_bounds = array<i64: 8, 128>}, {pipeline_mode = #tpu.pipeline_mode<synchronous>, transform_indices = @transform_1, window_bounds = array<i64: 128, 1024>}, {pipeline_mode = #tpu.pipeline_mode<synchronous>, transform_indices = @transform_2, window_bounds = array<i64: 1, 1024>}, {pipeline_mode = #tpu.pipeline_mode<synchronous>, transform_indices = @transform_3, window_bounds = array<i64: 1024, 512>}, {pipeline_mode = #tpu.pipeline_mode<synchronous>, transform_indices = @transform_4, window_bounds = array<i64: 1, 512>}, {pipeline_mode = #tpu.pipeline_mode<synchronous>, transform_indices = @transform_5, window_bounds = array<i64: 512, 128>}, {pipeline_mode = #tpu.pipeline_mode<synchronous>, transform_indices = @transform_6, window_bounds = array<i64: 1, 128>}, {pipeline_mode = #tpu.pipeline_mode<synchronous>, transform_indices = @transform_7, window_bounds = array<i64: 128, 128>}, {pipeline_mode = #tpu.pipeline_mode<synchronous>, transform_indices = @transform_8, window_bounds = array<i64: 1, 128>}, {pipeline_mode = #tpu.pipeline_mode<synchronous>, transform_indices = @transform_9, window_bounds = array<i64: 128, 128>}, {pipeline_mode = #tpu.pipeline_mode<synchronous>, transform_indices = @transform_10, window_bounds = array<i64: 1, 128>}, {transform_indices = @transform_11, window_bounds = array<i64: 8, 128>}]} {
    %c0 = arith.constant 0 : index
    %c0_0 = arith.constant 0 : index
    %0 = vector.load %arg1[%c0, %c0_0] : memref<8x128xbf16, #tpu.memory_space<vmem>>, vector<8x128xbf16>
    %c0_1 = arith.constant 0 : index
    %c0_2 = arith.constant 0 : index
    %1 = vector.load %arg2[%c0_1, %c0_2] : memref<128x1024xbf16, #tpu.memory_space<vmem>>, vector<128x1024xbf16>
    %cst = arith.constant dense<0.000000e+00> : vector<8x1024xf32>
    %2 = tpu.matmul %0, %1, %cst {dimension_numbers = #tpu.dot_dimension_numbers<[1], [0], [0], [1], [0, 0, 1, 1], [], []>} : vector<8x128xbf16>, vector<128x1024xbf16>, vector<8x1024xf32> -> vector<8x1024xf32>
    %c0_3 = arith.constant 0 : index
    %c0_4 = arith.constant 0 : index
    %3 = vector.load %arg3[%c0_3, %c0_4] : memref<1x1024xf32, #tpu.memory_space<vmem>>, vector<1x1024xf32>
    %4 = vector.broadcast %3 : vector<1x1024xf32> to vector<8x1024xf32>
    %5 = arith.addf %2, %4 : vector<8x1024xf32>
    %cst_5 = arith.constant 0.000000e+00 : f32
    %6 = vector.broadcast %cst_5 : f32 to vector<8x1024xf32>
    %7 = arith.maximumf %5, %6 : vector<8x1024xf32>
    %8 = arith.truncf %7 : vector<8x1024xf32> to vector<8x1024xbf16>
    %c0_6 = arith.constant 0 : index
    %c0_7 = arith.constant 0 : index
    %9 = vector.load %arg4[%c0_6, %c0_7] : memref<1024x512xbf16, #tpu.memory_space<vmem>>, vector<1024x512xbf16>
    %cst_8 = arith.constant dense<0.000000e+00> : vector<8x512xf32>
    %10 = tpu.matmul %8, %9, %cst_8 {dimension_numbers = #tpu.dot_dimension_numbers<[1], [0], [0], [1], [0, 0, 1, 1], [], []>} : vector<8x1024xbf16>, vector<1024x512xbf16>, vector<8x512xf32> -> vector<8x512xf32>
    %c0_9 = arith.constant 0 : index
    %c0_10 = arith.constant 0 : index
    %11 = vector.load %arg5[%c0_9, %c0_10] : memref<1x512xf32, #tpu.memory_space<vmem>>, vector<1x512xf32>
    %12 = vector.broadcast %11 : vector<1x512xf32> to vector<8x512xf32>
    %13 = arith.addf %10, %12 : vector<8x512xf32>
    %cst_11 = arith.constant 0.000000e+00 : f32
    %14 = vector.broadcast %cst_11 : f32 to vector<8x512xf32>
    %15 = arith.maximumf %13, %14 : vector<8x512xf32>
    %16 = arith.truncf %15 : vector<8x512xf32> to vector<8x512xbf16>
    %c0_12 = arith.constant 0 : index
    %c0_13 = arith.constant 0 : index
    %17 = vector.load %arg6[%c0_12, %c0_13] : memref<512x128xbf16, #tpu.memory_space<vmem>>, vector<512x128xbf16>
    %cst_14 = arith.constant dense<0.000000e+00> : vector<8x128xf32>
    %18 = tpu.matmul %16, %17, %cst_14 {dimension_numbers = #tpu.dot_dimension_numbers<[1], [0], [0], [1], [0, 0, 1, 1], [], []>} : vector<8x512xbf16>, vector<512x128xbf16>, vector<8x128xf32> -> vector<8x128xf32>
    %c0_15 = arith.constant 0 : index
    %c0_16 = arith.constant 0 : index
    %19 = vector.load %arg7[%c0_15, %c0_16] : memref<1x128xf32, #tpu.memory_space<vmem>>, vector<1x128xf32>
    %20 = vector.broadcast %19 : vector<1x128xf32> to vector<8x128xf32>
    %21 = arith.addf %18, %20 : vector<8x128xf32>
    %cst_17 = arith.constant 0.000000e+00 : f32
    %22 = vector.broadcast %cst_17 : f32 to vector<8x128xf32>
    %23 = arith.maximumf %21, %22 : vector<8x128xf32>
    %24 = arith.truncf %23 : vector<8x128xf32> to vector<8x128xbf16>
    %c0_18 = arith.constant 0 : index
    %c0_19 = arith.constant 0 : index
    %25 = vector.load %arg8[%c0_18, %c0_19] : memref<128x128xbf16, #tpu.memory_space<vmem>>, vector<128x128xbf16>
    %cst_20 = arith.constant dense<0.000000e+00> : vector<8x128xf32>
    %26 = tpu.matmul %24, %25, %cst_20 {dimension_numbers = #tpu.dot_dimension_numbers<[1], [0], [0], [1], [0, 0, 1, 1], [], []>} : vector<8x128xbf16>, vector<128x128xbf16>, vector<8x128xf32> -> vector<8x128xf32>
    %c0_21 = arith.constant 0 : index
    %c0_22 = arith.constant 0 : index
    %27 = vector.load %arg9[%c0_21, %c0_22] : memref<1x128xf32, #tpu.memory_space<vmem>>, vector<1x128xf32>
    %28 = vector.broadcast %27 : vector<1x128xf32> to vector<8x128xf32>
    %29 = arith.addf %26, %28 : vector<8x128xf32>
    %cst_23 = arith.constant 0.000000e+00 : f32
    %30 = vector.broadcast %cst_23 : f32 to vector<8x128xf32>
    %31 = arith.maximumf %29, %30 : vector<8x128xf32>
    %32 = arith.truncf %31 : vector<8x128xf32> to vector<8x128xbf16>
    %c0_24 = arith.constant 0 : index
    %c0_25 = arith.constant 0 : index
    %33 = vector.load %arg10[%c0_24, %c0_25] : memref<128x128xbf16, #tpu.memory_space<vmem>>, vector<128x128xbf16>
    %cst_26 = arith.constant dense<0.000000e+00> : vector<8x128xf32>
    %34 = tpu.matmul %32, %33, %cst_26 {dimension_numbers = #tpu.dot_dimension_numbers<[1], [0], [0], [1], [0, 0, 1, 1], [], []>} : vector<8x128xbf16>, vector<128x128xbf16>, vector<8x128xf32> -> vector<8x128xf32>
    %c0_27 = arith.constant 0 : index
    %c0_28 = arith.constant 0 : index
    %35 = vector.load %arg11[%c0_27, %c0_28] : memref<1x128xf32, #tpu.memory_space<vmem>>, vector<1x128xf32>
    %36 = vector.broadcast %35 : vector<1x128xf32> to vector<8x128xf32>
    %37 = arith.addf %34, %36 : vector<8x128xf32>
    %c0_29 = arith.constant 0 : index
    %c0_30 = arith.constant 0 : index
    %38 = vector.load %arg12[%c0_29, %c0_30] : memref<8x128xf32, #tpu.memory_space<vmem>>, vector<8x128xf32>
    tpu.vector_store %arg12[%c0_29, %c0_30], %37 {strides = array<i32>} : memref<8x128xf32, #tpu.memory_space<vmem>>, vector<8x128xf32>,
    return
  }
  func.func @transform_0(%arg0: i32) -> (i32, i32) {
    %c0_i32 = arith.constant 0 : i32
    %c0_i32_0 = arith.constant 0 : i32
    return %arg0, %c0_i32 : i32, i32
  }
  func.func @transform_1(%arg0: i32) -> (i32, i32) {
    %c0_i32 = arith.constant 0 : i32
    %c0_i32_0 = arith.constant 0 : i32
    %c0_i32_1 = arith.constant 0 : i32
    return %c0_i32, %c0_i32_0 : i32, i32
  }
  func.func @transform_2(%arg0: i32) -> (i32, i32) {
    %c0_i32 = arith.constant 0 : i32
    %c0_i32_0 = arith.constant 0 : i32
    %c0_i32_1 = arith.constant 0 : i32
    return %c0_i32, %c0_i32_0 : i32, i32
  }
  func.func @transform_3(%arg0: i32) -> (i32, i32) {
    %c0_i32 = arith.constant 0 : i32
    %c0_i32_0 = arith.constant 0 : i32
    %c0_i32_1 = arith.constant 0 : i32
    return %c0_i32, %c0_i32_0 : i32, i32
  }
  func.func @transform_4(%arg0: i32) -> (i32, i32) {
    %c0_i32 = arith.constant 0 : i32
    %c0_i32_0 = arith.constant 0 : i32
    %c0_i32_1 = arith.constant 0 : i32
    return %c0_i32, %c0_i32_0 : i32, i32
  }
  func.func @transform_5(%arg0: i32) -> (i32, i32) {
    %c0_i32 = arith.constant 0 : i32
    %c0_i32_0 = arith.constant 0 : i32
    %c0_i32_1 = arith.constant 0 : i32
    return %c0_i32, %c0_i32_0 : i32, i32
  }
  func.func @transform_6(%arg0: i32) -> (i32, i32) {
    %c0_i32 = arith.constant 0 : i32
    %c0_i32_0 = arith.constant 0 : i32
    %c0_i32_1 = arith.constant 0 : i32
    return %c0_i32, %c0_i32_0 : i32, i32
  }
  func.func @transform_7(%arg0: i32) -> (i32, i32) {
    %c0_i32 = arith.constant 0 : i32
    %c0_i32_0 = arith.constant 0 : i32
    %c0_i32_1 = arith.constant 0 : i32
    return %c0_i32, %c0_i32_0 : i32, i32
  }
  func.func @transform_8(%arg0: i32) -> (i32, i32) {
    %c0_i32 = arith.constant 0 : i32
    %c0_i32_0 = arith.constant 0 : i32
    %c0_i32_1 = arith.constant 0 : i32
    return %c0_i32, %c0_i32_0 : i32, i32
  }
  func.func @transform_9(%arg0: i32) -> (i32, i32) {
    %c0_i32 = arith.constant 0 : i32
    %c0_i32_0 = arith.constant 0 : i32
    %c0_i32_1 = arith.constant 0 : i32
    return %c0_i32, %c0_i32_0 : i32, i32
  }
  func.func @transform_10(%arg0: i32) -> (i32, i32) {
    %c0_i32 = arith.constant 0 : i32
    %c0_i32_0 = arith.constant 0 : i32
    %c0_i32_1 = arith.constant 0 : i32
    return %c0_i32, %c0_i32_0 : i32, i32
  }
  func.func @transform_11(%arg0: i32) -> (i32, i32) {
    %c0_i32 = arith.constant 0 : i32
    %c0_i32_0 = arith.constant 0 : i32
    return %arg0, %c0_i32 : i32, i32
  }
}

</mosaic_0001>

<bundles_post_ra>
// kernel: tpu_custom_call.1
= control target key start
LH: loop header
LB: loop body
LE: loop exit
PB: predicated region body
PF: predicated region fallthrough
CT: control target
= control target key end

     0   :  { %16 = vsyncpa [#allocation3], 0  ;;  %s5455_s0 = inlined_call_operand.hbm [shape: bf16[8,128], index: 0, kind: input, shape index: {}]   ;;  %s5456_s1 = inlined_call_operand.hbm [shape: bf16[128,1024], index: 1, kind: input, shape index: {}]   ;;  %s5457_s2 = inlined_call_operand.hbm [shape: f32[1,1024], index: 2, kind: input, shape index: {}]   ;;  %s5458_s3 = inlined_call_operand.hbm [shape: bf16[1024,512], index: 3, kind: input, shape index: {}]   ;;  %s5459_s4 = inlined_call_operand.hbm [shape: f32[1,512], index: 4, kind: input, shape index: {}]   ;;  %s5460_s5 = inlined_call_operand.hbm [shape: bf16[512,128], index: 5, kind: input, shape index: {}]   ;;  %s5461_s6 = inlined_call_operand.vmem [shape: f32[1,128], index: 6, kind: input, shape index: {}]   ;;  %s5462_s7 = inlined_call_operand.hbm [shape: bf16[128,128], index: 7, kind: input, shape index: {}]   ;;  %s5463_s8 = inlined_call_operand.vmem [shape: f32[1,128], index: 8, kind: input, shape index: {}]   ;;  %s5464_s9 = inlined_call_operand.hbm [shape: bf16[128,128], index: 9, kind: input, shape index: {}]   ;;  %s5465_s10 = inlined_call_operand.vmem [shape: f32[1,128], index: 10, kind: input, shape index: {}]   ;;  %s5466_s11 = inlined_call_operand.hbm [shape: f32[8,128], index: 11, kind: output, shape index: {}]  }
   0x1   :  { %17 = vsyncpa [#allocation6], 0 }
   0x2   :  { %18 = vsyncpa [#allocation9], 0 }
   0x3   :  { %19 = vsyncpa [#allocation12], 0 }
   0x4   :  { %20 = vsyncpa [#allocation15], 0  ;;  %s37_s19 = sshll.u32 %s5456_s1, 4  ;;  %s38_s19 = int_to_ptr.hbm [resolvable:$true] %s37_s19 }
   0x5   :  { %21 = vsyncpa [#allocation4], 0  ;;  %s5237_s20 = smov [#allocation5]   ;;  %s61_s24 = sshll.u32 %s5458_s3, 4  ;;  %s62_s24 = int_to_ptr.hbm [resolvable:$true] %s61_s24 }
   0x6   :  { %s39_s21 = sshll.u32 %s5237_s20, 4  ;;  %s5238_s25 = smov 512   ;;  %s40_s21 = int_to_ptr.vmem [resolvable:$true] %s39_s21 }
   0x7   :  { %s5239_s26 = smov 32   ;;  %s5240_s27 = smov [#allocation8]  }
   0x8   :  { %45 = dma.hbm_to_vmem [thread:$0]  %s38_s19, 8192, %s40_s21, [#allocation6], %s5238_s25, %s5238_s25, %s5239_s26  }
   0x9   :  { %s63_s28 = sshll.u32 %s5240_s27, 4  ;;  %s5241_s29 = smov 256   ;;  %s64_s28 = int_to_ptr.vmem [resolvable:$true] %s63_s28 }
   0xa   :  { %s5242_s30 = smov 16   ;;  %s85_s13 = sshll.u32 %s5460_s5, 4  ;;  %s86_s13 = int_to_ptr.hbm [resolvable:$true] %s85_s13 }
   0xb   :  { %69 = dma.hbm_to_vmem [thread:$0]  %s62_s24, 32768, %s64_s28, [#allocation9], %s5241_s29, %s5241_s29, %s5242_s30  }
   0xc   :  { %s5243_s14 = smov [#allocation11]   ;;  %s27_s17 = sshll.u32 %s5455_s0, 4  ;;  %s28_s17 = int_to_ptr.hbm [resolvable:$true] %s27_s17 }
   0xd   :  { %s87_s15 = sshll.u32 %s5243_s14, 4  ;;  %s5244_s18 = smov 64   ;;  %s88_s15 = int_to_ptr.vmem [resolvable:$true] %s87_s15 }
   0xe   :  { %s5245_s19 = smov 4   ;;  %s5246_s20 = smov [#allocation2]  }
   0xf   :  { %93 = dma.hbm_to_vmem [thread:$0]  %s86_s13, 4096, %s88_s15, [#allocation12], %s5244_s18, %s5244_s18, %s5245_s19  }
  0x10   :  { %s29_s21 = sshll.u32 %s5246_s20, 4  ;;  %s51_s5 = sshll.u32 %s5457_s2, 4  ;;  %s30_s21 = int_to_ptr.vmem [resolvable:$true] %s29_s21  ;;  %s52_s5 = int_to_ptr.hbm [resolvable:$true] %s51_s5 }
  0x11   :  { %32 = dma.hbm_to_vmem [thread:$0]  %s28_s17, 64, %s30_s21, [#allocation3]  }
  0x12   :  { %s75_s0 = sshll.u32 %s5459_s4, 4  ;;  %s5247_s26 = smov [#allocation7]   ;;  %s76_s0 = int_to_ptr.hbm [resolvable:$true] %s75_s0 }
  0x13   :  { %s53_s27 = sshll.u32 %s5247_s26, 4  ;;  %s5248_s28 = smov [#allocation10]   ;;  %s54_s27 = int_to_ptr.vmem [resolvable:$true] %s53_s27 }
  0x14   :  { %56 = dma.hbm_to_vmem [thread:$0]  %s52_s5, 128, %s54_s27, [#allocation6]  }
  0x15   :  { %s77_s29 = sshll.u32 %s5248_s28, 4  ;;  %s100_s12 = sshll.u32 %s5462_s7, 4  ;;  %s78_s29 = int_to_ptr.vmem [resolvable:$true] %s77_s29  ;;  %s101_s12 = int_to_ptr.hbm [resolvable:$true] %s100_s12 }
  0x16   :  { %80 = dma.hbm_to_vmem [thread:$0]  %s76_s0, 64, %s78_s29, [#allocation9]  }
  0x17   :  { %s115_s14 = sshll.u32 %s5464_s9, 4  ;;  %s5249_s15 = smov [#allocation13]   ;;  %s116_s14 = int_to_ptr.hbm [resolvable:$true] %s115_s14 }
  0x18   :  { %s102_s4 = sshll.u32 %s5249_s15, 4  ;;  %s5250_s16 = smov [#allocation14]   ;;  %s103_s4 = int_to_ptr.vmem [resolvable:$true] %s102_s4 }
  0x19   :  { %108 = dma.hbm_to_vmem [thread:$0]  %s101_s12, 1024, %s103_s4, [#allocation12], %s5244_s18, %s5244_s18, %s5245_s19  }
  0x1a   :  { %s117_s3 = sshll.u32 %s5250_s16, 4  ;;  %s118_s3 = int_to_ptr.vmem [resolvable:$true] %s117_s3 }
  0x1b   :  { %123 = dma.hbm_to_vmem [thread:$0]  %s116_s14, 1024, %s118_s3, [#allocation15], %s5244_s18, %s5244_s18, %s5245_s19  }
  0x1c   :  { %5225 = dma.done.wait [#allocation3], 64  }
  0x1d   :  { %5226 = vsyncadd [#allocation3], 4294967232 }
  0x1e   :  { %5227 = dma.done.wait [#allocation6], 8320  }
  0x1f   :  { %5228 = vsyncadd [#allocation6], 4294958976 }
  0x20   :  { %5229 = dma.done.wait [#allocation9], 32832  }
  0x21   :  { %5230 = vsyncadd [#allocation9], 4294934464 }
  0x22   :  { %5231 = dma.done.wait [#allocation12], 5120  }
  0x23   :  { %5232 = vsyncadd [#allocation12], 4294962176 }
  0x24   :  { %5233 = dma.done.wait [#allocation15], 1024  }
  0x25   :  { %5234 = vsyncadd [#allocation15], 4294966272  ;;  %v3377_v0 = vld [vmem:[#allocation5 + $0x1c0] sm:$0xf]  ;;  %v4679_v2 = vld [vmem:[#allocation5 + $0x1c4] sm:$0xf] }
  0x26   :  { %v4683_v1 = vld [vmem:[#allocation5 + $0x1dc] sm:$0xf0]  ;;  %v3379_v4 = vld [vmem:[#allocation5 + $0x1e0] sm:$0xf0]  ;;  %v3385_v5 = vld [vmem:[#allocation5 + $0x1c8] sm:$0xf] }
  0x27   :  { %v3378_v3 = vor.u32 %v4683_v1, %v3377_v0  ;;  %v4684_v6 = vld [vmem:[#allocation5 + $0x1e4] sm:$0xf0]  ;;  %v3382_v7 = vor.u32 %v4679_v2, %v3379_v4  ;;  %v4680_v9 = vld [vmem:[#allocation5 + $0x1cc] sm:$0xf]  ;;  %v3345_v11 = vld [vmem:[#allocation5 + $0x180] sm:$0xf] }
  0x28   :  { %v3386_v8 = vor.u32 %v4684_v6, %v3385_v5  ;;  %v3387_v10 = vld [vmem:[#allocation5 + $0x1e8] sm:$0xf0]  ;;  %v4675_v13 = vld [vmem:[#allocation5 + $0x19c] sm:$0xf0]  ;;  %v4671_v14 = vld [vmem:[#allocation5 + $0x184] sm:$0xf] }
  0x29   :  { %561 = vmatpush.bf16.msra.mxu0 %v3378_v3  ;;  %v3390_v12 = vor.u32 %v4680_v9, %v3387_v10  ;;  %v3347_v15 = vld [vmem:[#allocation5 + $0x1a0] sm:$0xf0]  ;;  %574 = vmatpush.bf16.msra.mxu1 %v3382_v7  ;;  %v3346_v16 = vor.u32 %v4675_v13, %v3345_v11  ;;  %v3353_v18 = vld [vmem:[#allocation5 + $0x188] sm:$0xf]  ;;  %v4672_v20 = vld [vmem:[#allocation5 + $0x18c] sm:$0xf] }
  0x2a   :  { %587 = vmatpush.bf16.msra.mxu2 %v3386_v8  ;;  %v3350_v17 = vor.u32 %v4671_v14, %v3347_v15  ;;  %v4676_v19 = vld [vmem:[#allocation5 + $0x1a4] sm:$0xf0]  ;;  %v3355_v22 = vld [vmem:[#allocation5 + $0x1a8] sm:$0xf0]  ;;  %v3313_v23 = vld [vmem:[#allocation5 + $0x140] sm:$0xf] }
  0x2b   :  { %600 = vmatpush.bf16.msra.mxu3 %v3390_v12  ;;  %v3354_v21 = vor.u32 %v4676_v19, %v3353_v18  ;;  %v4667_v24 = vld [vmem:[#allocation5 + $0x15c] sm:$0xf0]  ;;  %v3358_v25 = vor.u32 %v4672_v20, %v3355_v22  ;;  %v4663_v26 = vld [vmem:[#allocation5 + $0x144] sm:$0xf]  ;;  %v3321_v28 = vld [vmem:[#allocation5 + $0x148] sm:$0xf] }
  0x2c   :  { %v3315_v27 = vld [vmem:[#allocation5 + $0x160] sm:$0xf0]  ;;  %v3314_v29 = vor.u32 %v4667_v24, %v3313_v23  ;;  %v4668_v30 = vld [vmem:[#allocation5 + $0x164] sm:$0xf0]  ;;  %v4664_v31 = vld [vmem:[#allocation5 + $0x14c] sm:$0xf] }
  0x2d   :  { %562 = vmatpush.bf16.msra.mxu0 %v3346_v16  ;;  %v3323_v32 = vld [vmem:[#allocation5 + $0x168] sm:$0xf0]  ;;  %575 = vmatpush.bf16.msra.mxu1 %v3350_v17  ;;  %v3318_v33 = vor.u32 %v4663_v26, %v3315_v27  ;;  %v3322_v34 = vor.u32 %v4668_v30, %v3321_v28  ;;  %v3281_v35 = vld [vmem:[#allocation5 + $0x100] sm:$0xf]  ;;  %v4655_v37 = vld [vmem:[#allocation5 + $0x104] sm:$0xf] }
  0x2e   :  { %588 = vmatpush.bf16.msra.mxu2 %v3354_v21  ;;  %v4659_v36 = vld [vmem:[#allocation5 + $0x11c] sm:$0xf0]  ;;  %v3326_v38 = vor.u32 %v4664_v31, %v3323_v32  ;;  %v3283_v39 = vld [vmem:[#allocation5 + $0x120] sm:$0xf0]  ;;  %v3289_v40 = vld [vmem:[#allocation5 + $0x108] sm:$0xf] }
  0x2f   :  { %601 = vmatpush.bf16.msra.mxu3 %v3358_v25  ;;  %v4660_v41 = vld [vmem:[#allocation5 + $0x124] sm:$0xf0]  ;;  %v4656_v42 = vld [vmem:[#allocation5 + $0x10c] sm:$0xf]  ;;  %v3282_v44 = vor.u32 %v4659_v36, %v3281_v35  ;;  %v3286_v45 = vor.u32 %v4655_v37, %v3283_v39  ;;  %v3249_v47 = vld [vmem:[#allocation5 + $0xc0] sm:$0xf] }
  0x30   :  { %v3291_v43 = vld [vmem:[#allocation5 + $0x128] sm:$0xf0]  ;;  %v3290_v46 = vor.u32 %v4660_v41, %v3289_v40  ;;  %v4651_v48 = vld [vmem:[#allocation5 + $0xdc] sm:$0xf0]  ;;  %v4647_v49 = vld [vmem:[#allocation5 + $0xc4] sm:$0xf] }
  0x31   :  { %563 = vmatpush.bf16.msra.mxu0 %v3314_v29  ;;  %576 = vmatpush.bf16.msra.mxu1 %v3318_v33  ;;  %v3294_v50 = vor.u32 %v4656_v42, %v3291_v43  ;;  %v3251_v51 = vld [vmem:[#allocation5 + $0xe0] sm:$0xf0]  ;;  %v3257_v52 = vld [vmem:[#allocation5 + $0xc8] sm:$0xf]  ;;  %v4648_v54 = vld [vmem:[#allocation5 + $0xcc] sm:$0xf]  ;;  %v3250_v56 = vor.u32 %v4651_v48, %v3249_v47 }
  0x32   :  { %589 = vmatpush.bf16.msra.mxu2 %v3322_v34  ;;  %v4652_v53 = vld [vmem:[#allocation5 + $0xe4] sm:$0xf0]  ;;  %v3259_v55 = vld [vmem:[#allocation5 + $0xe8] sm:$0xf0]  ;;  %v3254_v57 = vor.u32 %v4647_v49, %v3251_v51  ;;  %v3217_v59 = vld [vmem:[#allocation5 + $0x80] sm:$0xf] }
  0x33   :  { %602 = vmatpush.bf16.msra.mxu3 %v3326_v38  ;;  %v3258_v58 = vor.u32 %v4652_v53, %v3257_v52  ;;  %v4643_v60 = vld [vmem:[#allocation5 + $0x9c] sm:$0xf0]  ;;  %v4639_v61 = vld [vmem:[#allocation5 + $0x84] sm:$0xf]  ;;  %v3262_v62 = vor.u32 %v4648_v54, %v3259_v55  ;;  %v3225_v0 = vld [vmem:[#allocation5 + $0x88] sm:$0xf] }
  0x34   :  { %v3219_v63 = vld [vmem:[#allocation5 + $0xa0] sm:$0xf0]  ;;  %v4644_v1 = vld [vmem:[#allocation5 + $0xa4] sm:$0xf0]  ;;  %v4640_v2 = vld [vmem:[#allocation5 + $0x8c] sm:$0xf]  ;;  %v3218_v4 = vor.u32 %v4643_v60, %v3217_v59 }
  0x35   :  { %564 = vmatpush.bf16.msra.mxu0 %v3282_v44  ;;  %577 = vmatpush.bf16.msra.mxu1 %v3286_v45  ;;  %v3227_v3 = vld [vmem:[#allocation5 + $0xa8] sm:$0xf0]  ;;  %v3222_v5 = vor.u32 %v4639_v61, %v3219_v63  ;;  %v3226_v6 = vor.u32 %v4644_v1, %v3225_v0  ;;  %v3185_v7 = vld [vmem:[#allocation5 + $0x40] sm:$0xf]  ;;  %v4631_v9 = vld [vmem:[#allocation5 + $0x44] sm:$0xf] }
  0x36   :  { %590 = vmatpush.bf16.msra.mxu2 %v3290_v46  ;;  %v4635_v8 = vld [vmem:[#allocation5 + $0x5c] sm:$0xf0]  ;;  %v3230_v10 = vor.u32 %v4640_v2, %v3227_v3  ;;  %v3187_v11 = vld [vmem:[#allocation5 + $0x60] sm:$0xf0]  ;;  %v3193_v12 = vld [vmem:[#allocation5 + $0x48] sm:$0xf] }
  0x37   :  { %603 = vmatpush.bf16.msra.mxu3 %v3294_v50  ;;  %v4636_v13 = vld [vmem:[#allocation5 + $0x64] sm:$0xf0]  ;;  %v4632_v14 = vld [vmem:[#allocation5 + $0x4c] sm:$0xf]  ;;  %v3186_v16 = vor.u32 %v4635_v8, %v3185_v7  ;;  %v3153_v17 = vld [vmem:[#allocation5] sm:$0xf]  ;;  %v3190_v19 = vor.u32 %v4631_v9, %v3187_v11 }
  0x38   :  { %v3195_v15 = vld [vmem:[#allocation5 + $0x68] sm:$0xf0]  ;;  %v4627_v18 = vld [vmem:[#allocation5 + $0x1c] sm:$0xf0]  ;;  %v3194_v20 = vor.u32 %v4636_v13, %v3193_v12  ;;  %v4623_v21 = vld [vmem:[#allocation5 + $0x4] sm:$0xf] }
  0x39   :  { %565 = vmatpush.bf16.msra.mxu0 %v3250_v56  ;;  %578 = vmatpush.bf16.msra.mxu1 %v3254_v57  ;;  %v3155_v22 = vld [vmem:[#allocation5 + $0x20] sm:$0xf0]  ;;  %v3161_v23 = vld [vmem:[#allocation5 + $0x8] sm:$0xf]  ;;  %v3198_v24 = vor.u32 %v4632_v14, %v3195_v15  ;;  %v4624_v26 = vld [vmem:[#allocation5 + $0xc] sm:$0xf]  ;;  %v3154_v31 = vor.u32 %v4627_v18, %v3153_v17 }
  0x3a   :  { %591 = vmatpush.bf16.msra.mxu2 %v3258_v58  ;;  %v4628_v25 = vld [vmem:[#allocation5 + $0x24] sm:$0xf0]  ;;  %v3163_v27 = vld [vmem:[#allocation5 + $0x28] sm:$0xf0]  ;;  %v3393_v28 = vld [vmem:[#allocation5 + $0x1d0] sm:$0xf]  ;;  %v3158_v35 = vor.u32 %v4623_v21, %v3155_v22 }
  0x3b   :  { %604 = vmatpush.bf16.msra.mxu3 %v3262_v62  ;;  %v4685_v29 = vld [vmem:[#allocation5 + $0x1ec] sm:$0xf0]  ;;  %v4681_v30 = vld [vmem:[#allocation5 + $0x1d4] sm:$0xf]  ;;  %v3401_v33 = vld [vmem:[#allocation5 + $0x1d8] sm:$0xf]  ;;  %v3162_v36 = vor.u32 %v4628_v25, %v3161_v23  ;;  %v3166_v39 = vor.u32 %v4624_v26, %v3163_v27 }
  0x3c   :  { %v3395_v32 = vld [vmem:[#allocation5 + $0x1f0] sm:$0xf0]  ;;  %v4686_v34 = vld [vmem:[#allocation5 + $0x1f4] sm:$0xf0]  ;;  %v4682_v37 = vld [vmem:[#allocation5 + $0x1dc] sm:$0xf]  ;;  %v3394_v40 = vor.u32 %v4685_v29, %v3393_v28 }
  0x3d   :  { %566 = vmatpush.bf16.msra.mxu0 %v3218_v4  ;;  %579 = vmatpush.bf16.msra.mxu1 %v3222_v5  ;;  %v3403_v38 = vld [vmem:[#allocation5 + $0x1f8] sm:$0xf0]  ;;  %v3398_v41 = vor.u32 %v4681_v30, %v3395_v32  ;;  %v3402_v42 = vor.u32 %v4686_v34, %v3401_v33  ;;  %v3361_v43 = vld [vmem:[#allocation5 + $0x190] sm:$0xf]  ;;  %v4673_v45 = vld [vmem:[#allocation5 + $0x194] sm:$0xf] }
  0x3e   :  { %592 = vmatpush.bf16.msra.mxu2 %v3226_v6  ;;  %v4677_v44 = vld [vmem:[#allocation5 + $0x1ac] sm:$0xf0]  ;;  %v3406_v46 = vor.u32 %v4682_v37, %v3403_v38  ;;  %v3363_v47 = vld [vmem:[#allocation5 + $0x1b0] sm:$0xf0]  ;;  %v3369_v48 = vld [vmem:[#allocation5 + $0x198] sm:$0xf] }
  0x3f   :  { %605 = vmatpush.bf16.msra.mxu3 %v3230_v10  ;;  %v4678_v49 = vld [vmem:[#allocation5 + $0x1b4] sm:$0xf0]  ;;  %v5345_v50 = vld [vmem:[#allocation2] sm:$0xf]  ;;  %v3362_v53 = vor.u32 %v4677_v44, %v3361_v43  ;;  %v3366_v54 = vor.u32 %v4673_v45, %v3363_v47  ;;  %v3329_v56 = vld [vmem:[#allocation5 + $0x150] sm:$0xf] }
  0x40   :  { %v4674_v51 = vld [vmem:[#allocation5 + $0x19c] sm:$0xf]  ;;  %v3370_v55 = vor.u32 %v4678_v49, %v3369_v48  ;;  %v4669_v57 = vld [vmem:[#allocation5 + $0x16c] sm:$0xf0]  ;;  %v4665_v58 = vld [vmem:[#allocation5 + $0x154] sm:$0xf] }
  0x41   :  { %567 = vmatpush.bf16.msra.mxu0 %v3186_v16  ;;  %580 = vmatpush.bf16.msra.mxu1 %v3190_v19  ;;  %v3371_v52 = vld [vmem:[#allocation5 + $0x1b8] sm:$0xf0]  ;;  %v3331_v60 = vld [vmem:[#allocation5 + $0x170] sm:$0xf0]  ;;  %v3337_v61 = vld [vmem:[#allocation5 + $0x158] sm:$0xf]  ;;  %v3330_v1 = vor.u32 %v4669_v57, %v3329_v56 }
  0x42   :  { %593 = vmatpush.bf16.msra.mxu2 %v3194_v20  ;;  %v3374_v59 = vor.u32 %v4674_v51, %v3371_v52  ;;  %v4670_v62 = vld [vmem:[#allocation5 + $0x174] sm:$0xf0]  ;;  %v4666_v63 = vld [vmem:[#allocation5 + $0x15c] sm:$0xf]  ;;  %v3334_v2 = vor.u32 %v4665_v58, %v3331_v60  ;;  %v3297_v4 = vld [vmem:[#allocation5 + $0x110] sm:$0xf] }
  0x43   :  { %606 = vmatpush.bf16.msra.mxu3 %v3198_v24  ;;  %v3339_v0 = vld [vmem:[#allocation5 + $0x178] sm:$0xf0]  ;;  %v3338_v3 = vor.u32 %v4670_v62, %v3337_v61  ;;  %v4661_v5 = vld [vmem:[#allocation5 + $0x12c] sm:$0xf0]  ;;  %v4657_v6 = vld [vmem:[#allocation5 + $0x114] sm:$0xf] }
  0x44   :  { %v3342_v7 = vor.u32 %v4666_v63, %v3339_v0  ;;  %v3299_v8 = vld [vmem:[#allocation5 + $0x130] sm:$0xf0]  ;;  %v3305_v9 = vld [vmem:[#allocation5 + $0x118] sm:$0xf]  ;;  %v4658_v11 = vld [vmem:[#allocation5 + $0x11c] sm:$0xf]  ;;  %v3298_v13 = vor.u32 %v4661_v5, %v3297_v4 }
  0x45   :  { %568 = vmatpush.bf16.msra.mxu0 %v3154_v31  ;;  %581 = vmatpush.bf16.msra.mxu1 %v3158_v35  ;;  %v4662_v10 = vld [vmem:[#allocation5 + $0x134] sm:$0xf0]  ;;  %v3307_v12 = vld [vmem:[#allocation5 + $0x138] sm:$0xf0]  ;;  %v3302_v14 = vor.u32 %v4657_v6, %v3299_v8  ;;  %v3265_v16 = vld [vmem:[#allocation5 + $0xd0] sm:$0xf] }
  0x46   :  { %594 = vmatpush.bf16.msra.mxu2 %v3162_v36  ;;  %v3306_v15 = vor.u32 %v4662_v10, %v3305_v9  ;;  %v4653_v17 = vld [vmem:[#allocation5 + $0xec] sm:$0xf0]  ;;  %v4649_v18 = vld [vmem:[#allocation5 + $0xd4] sm:$0xf]  ;;  %v3310_v19 = vor.u32 %v4658_v11, %v3307_v12  ;;  %v3273_v21 = vld [vmem:[#allocation5 + $0xd8] sm:$0xf] }
  0x47   :  { %607 = vmatpush.bf16.msra.mxu3 %v3166_v39  ;;  %v3267_v20 = vld [vmem:[#allocation5 + $0xf0] sm:$0xf0]  ;;  %v4654_v22 = vld [vmem:[#allocation5 + $0xf4] sm:$0xf0]  ;;  %v4650_v23 = vld [vmem:[#allocation5 + $0xdc] sm:$0xf]  ;;  %v3266_v25 = vor.u32 %v4653_v17, %v3265_v16 }
  0x48   :  { %569 = vmatmul.bf16.vlgmr.msra.gmra.mxu0 %v5345_v50  ;;  %582 = vmatmul.bf16.vlgmr.msra.gmra.mxu1 %v5345_v50  ;;  %v3275_v24 = vld [vmem:[#allocation5 + $0xf8] sm:$0xf0]  ;;  %v3270_v26 = vor.u32 %v4649_v18, %v3267_v20  ;;  %v3274_v27 = vor.u32 %v4654_v22, %v3273_v21  ;;  %v3233_v28 = vld [vmem:[#allocation5 + $0x90] sm:$0xf]  ;;  %v4641_v30 = vld [vmem:[#allocation5 + $0x94] sm:$0xf] }
  0x49   :  { %613 = vmatpush.bf16.msrb.mxu0 %v3394_v40  ;;  %626 = vmatpush.bf16.msrb.mxu1 %v3398_v41  ;;  %v4645_v29 = vld [vmem:[#allocation5 + $0xac] sm:$0xf0]  ;;  %v3278_v31 = vor.u32 %v4650_v23, %v3275_v24  ;;  %v3235_v32 = vld [vmem:[#allocation5 + $0xb0] sm:$0xf0]  ;;  %v3241_v33 = vld [vmem:[#allocation5 + $0x98] sm:$0xf] }
  0x4a   :  { %639 = vmatpush.bf16.msrb.mxu2 %v3402_v42  ;;  %608 = vmatmul.bf16.vlgmr.msra.gmra.mxu3 %v5345_v50  ;;  %v4646_v34 = vld [vmem:[#allocation5 + $0xb4] sm:$0xf0]  ;;  %v4642_v35 = vld [vmem:[#allocation5 + $0x9c] sm:$0xf]  ;;  %v3234_v37 = vor.u32 %v4645_v29, %v3233_v28  ;;  %v3238_v38 = vor.u32 %v4641_v30, %v3235_v32  ;;  %v3201_v40 = vld [vmem:[#allocation5 + $0x50] sm:$0xf] }
  0x4b   :  { %652 = vmatpush.bf16.msrb.mxu3 %v3406_v46  ;;  %595 = vmatmul.bf16.vlgmr.msra.gmra.mxu2 %v5345_v50  ;;  %v3243_v36 = vld [vmem:[#allocation5 + $0xb8] sm:$0xf0]  ;;  %v3242_v39 = vor.u32 %v4646_v34, %v3241_v33  ;;  %v4637_v41 = vld [vmem:[#allocation5 + $0x6c] sm:$0xf0]  ;;  %v4633_v42 = vld [vmem:[#allocation5 + $0x54] sm:$0xf] }
  0x4c   :  { %v3246_v43 = vor.u32 %v4642_v35, %v3243_v36  ;;  %v3203_v44 = vld [vmem:[#allocation5 + $0x70] sm:$0xf0]  ;;  %v3209_v45 = vld [vmem:[#allocation5 + $0x58] sm:$0xf]  ;;  %v4634_v47 = vld [vmem:[#allocation5 + $0x5c] sm:$0xf]  ;;  %v3202_v49 = vor.u32 %v4637_v41, %v3201_v40 }
  0x4d   :  { %614 = vmatpush.bf16.msrb.mxu0 %v3362_v53  ;;  %627 = vmatpush.bf16.msrb.mxu1 %v3366_v54  ;;  %v4638_v46 = vld [vmem:[#allocation5 + $0x74] sm:$0xf0]  ;;  %v3211_v48 = vld [vmem:[#allocation5 + $0x78] sm:$0xf0]  ;;  %v3169_v51 = vld [vmem:[#allocation5 + $0x10] sm:$0xf]  ;;  %v3206_v52 = vor.u32 %v4633_v42, %v3203_v44 }
  0x4e   :  { %640 = vmatpush.bf16.msrb.mxu2 %v3370_v55  ;;  %v3210_v53 = vor.u32 %v4638_v46, %v3209_v45  ;;  %v4629_v54 = vld [vmem:[#allocation5 + $0x2c] sm:$0xf0]  ;;  %v4625_v55 = vld [vmem:[#allocation5 + $0x14] sm:$0xf]  ;;  %v3214_v57 = vor.u32 %v4634_v47, %v3211_v48  ;;  %v3177_v58 = vld [vmem:[#allocation5 + $0x18] sm:$0xf] }
  0x4f   :  { %653 = vmatpush.bf16.msrb.mxu3 %v3374_v59  ;;  %v3171_v56 = vld [vmem:[#allocation5 + $0x30] sm:$0xf0]  ;;  %v4630_v59 = vld [vmem:[#allocation5 + $0x34] sm:$0xf0]  ;;  %v4626_v60 = vld [vmem:[#allocation5 + $0x1c] sm:$0xf]  ;;  %v3170_v0 = vor.u32 %v4629_v54, %v3169_v51 }
  0x50   :  { %v3179_v61 = vld [vmem:[#allocation5 + $0x38] sm:$0xf0]  ;;  %v3521_v62 = vld [vmem:[#allocation8 + $0xe0] sm:$0xf]  ;;  %v4717_v63 = vld [vmem:[#allocation8 + $0xec] sm:$0xf0]  ;;  %v3178_v4 = vor.u32 %v4630_v59, %v3177_v58 }
  0x51   :  { %615 = vmatpush.bf16.msrb.mxu0 %v3330_v1  ;;  %628 = vmatpush.bf16.msrb.mxu1 %v3334_v2  ;;  %v3649_v1 = vld [vmem:[#allocation8 + $0x1e0] sm:$0xf]  ;;  %v4749_v2 = vld [vmem:[#allocation8 + $0x1ec] sm:$0xf0]  ;;  %v3182_v5 = vor.u32 %v4626_v60, %v3179_v61  ;;  %v3522_v6 = vor.u32 %v4717_v63, %v3521_v62  ;;  %s5251_s20 = smov [#allocation16]   ;;  %s3137_s5 = sshll.u32 %s5466_s11, 4  ;;  %s3138_s5 = int_to_ptr.hbm [resolvable:$true] %s3137_s5 }
  0x52   :  { %641 = vmatpush.bf16.msrb.mxu2 %v3338_v3  ;;  %v3174_v3 = vor.u32 %v4625_v55, %v3171_v56  ;;  %v3777_v8 = vld [vmem:[#allocation8 + $0x2e0] sm:$0xf]  ;;  %v4781_v9 = vld [vmem:[#allocation8 + $0x2ec] sm:$0xf0]  ;;  %v3650_v10 = vor.u32 %v4749_v2, %v3649_v1  ;;  %s3135_s21 = sshll.u32 %s5251_s20, 4  ;;  %s3136_s21 = int_to_ptr.vmem [resolvable:$true] %s3135_s21 }
  0x53   :  { %654 = vmatpush.bf16.msrb.mxu3 %v3342_v7  ;;  %v3505_v7 = vld [vmem:[#allocation8 + $0xc0] sm:$0xf]  ;;  %v4713_v11 = vld [vmem:[#allocation8 + $0xcc] sm:$0xf0]  ;;  %v3778_v16 = vor.u32 %v4781_v9, %v3777_v8 }
  0x54   :  { %v3905_v12 = vld [vmem:[#allocation8 + $0x3e0] sm:$0xf]  ;;  %v3506_v17 = vor.u32 %v4713_v11, %v3505_v7  ;;  %v4777_v21 = vld [vmem:[#allocation8 + $0x2cc] sm:$0xf0] }
  0x55   :  { %616 = vmatpush.bf16.msrb.mxu0 %v3298_v13  ;;  %629 = vmatpush.bf16.msrb.mxu1 %v3302_v14  ;;  %v4813_v13 = vld [vmem:[#allocation8 + $0x3ec] sm:$0xf0]  ;;  %v3633_v14 = vld [vmem:[#allocation8 + $0x1c0] sm:$0xf] }
  0x56   :  { %642 = vmatpush.bf16.msrb.mxu2 %v3306_v15  ;;  %v4745_v15 = vld [vmem:[#allocation8 + $0x1cc] sm:$0xf0]  ;;  %v3906_v18 = vor.u32 %v4813_v13, %v3905_v12  ;;  %v3761_v20 = vld [vmem:[#allocation8 + $0x2c0] sm:$0xf] }
  0x57   :  { %655 = vmatpush.bf16.msrb.mxu3 %v3310_v19  ;;  %v3489_v19 = vld [vmem:[#allocation8 + $0xa0] sm:$0xf]  ;;  %v3634_v22 = vor.u32 %v4745_v15, %v3633_v14  ;;  %v4709_v23 = vld [vmem:[#allocation8 + $0xac] sm:$0xf0]  ;;  %v3762_v28 = vor.u32 %v4777_v21, %v3761_v20 }
  0x58   :  { %v3889_v24 = vld [vmem:[#allocation8 + $0x3c0] sm:$0xf]  ;;  %v3490_v29 = vor.u32 %v4709_v23, %v3489_v19  ;;  %v4773_v33 = vld [vmem:[#allocation8 + $0x2ac] sm:$0xf0] }
  0x59   :  { %617 = vmatpush.bf16.msrb.mxu0 %v3266_v25  ;;  %630 = vmatpush.bf16.msrb.mxu1 %v3270_v26  ;;  %v4809_v25 = vld [vmem:[#allocation8 + $0x3cc] sm:$0xf0]  ;;  %v3617_v26 = vld [vmem:[#allocation8 + $0x1a0] sm:$0xf] }
  0x5a   :  { %643 = vmatpush.bf16.msrb.mxu2 %v3274_v27  ;;  %v4741_v27 = vld [vmem:[#allocation8 + $0x1ac] sm:$0xf0]  ;;  %v3890_v30 = vor.u32 %v4809_v25, %v3889_v24  ;;  %v3745_v32 = vld [vmem:[#allocation8 + $0x2a0] sm:$0xf] }
  0x5b   :  { %656 = vmatpush.bf16.msrb.mxu3 %v3278_v31  ;;  %v3473_v31 = vld [vmem:[#allocation8 + $0x80] sm:$0xf]  ;;  %v3618_v34 = vor.u32 %v4741_v27, %v3617_v26  ;;  %v4705_v35 = vld [vmem:[#allocation8 + $0x8c] sm:$0xf0]  ;;  %v3746_v40 = vor.u32 %v4773_v33, %v3745_v32 }
  0x5c   :  { %v3873_v36 = vld [vmem:[#allocation8 + $0x3a0] sm:$0xf]  ;;  %v3474_v42 = vor.u32 %v4705_v35, %v3473_v31  ;;  %v4769_v45 = vld [vmem:[#allocation8 + $0x28c] sm:$0xf0] }
  0x5d   :  { %618 = vmatpush.bf16.msrb.mxu0 %v3234_v37  ;;  %631 = vmatpush.bf16.msrb.mxu1 %v3238_v38  ;;  %v4805_v37 = vld [vmem:[#allocation8 + $0x3ac] sm:$0xf0]  ;;  %v3601_v38 = vld [vmem:[#allocation8 + $0x180] sm:$0xf] }
  0x5e   :  { %644 = vmatpush.bf16.msrb.mxu2 %v3242_v39  ;;  %v4737_v39 = vld [vmem:[#allocation8 + $0x18c] sm:$0xf0]  ;;  %v3457_v41 = vld [vmem:[#allocation8 + $0x60] sm:$0xf] }
  0x5f   :  { %657 = vmatpush.bf16.msrb.mxu3 %v3246_v43  ;;  %v3874_v43 = vor.u32 %v4805_v37, %v3873_v36  ;;  %v3729_v44 = vld [vmem:[#allocation8 + $0x280] sm:$0xf]  ;;  %v3602_v46 = vor.u32 %v4737_v39, %v3601_v38  ;;  %v4801_v48 = vld [vmem:[#allocation8 + $0x38c] sm:$0xf0] }
  0x60   :  { %v3857_v47 = vld [vmem:[#allocation8 + $0x380] sm:$0xf]  ;;  %v4733_v51 = vld [vmem:[#allocation8 + $0x16c] sm:$0xf0] }
  0x61   :  { %619 = vmatpush.bf16.msrb.mxu0 %v3202_v49  ;;  %632 = vmatpush.bf16.msrb.mxu1 %v3206_v52  ;;  %v3585_v49 = vld [vmem:[#allocation8 + $0x160] sm:$0xf]  ;;  %v3730_v52 = vor.u32 %v4769_v45, %v3729_v44  ;;  %v3858_v55 = vor.u32 %v4801_v48, %v3857_v47  ;;  %v4697_v59 = vld [vmem:[#allocation8 + $0x4c] sm:$0xf0] }
  0x62   :  { %645 = vmatpush.bf16.msrb.mxu2 %v3210_v53  ;;  %v3441_v53 = vld [vmem:[#allocation8 + $0x40] sm:$0xf]  ;;  %v3586_v58 = vor.u32 %v4733_v51, %v3585_v49  ;;  %v4797_v61 = vld [vmem:[#allocation8 + $0x36c] sm:$0xf0] }
  0x63   :  { %658 = vmatpush.bf16.msrb.mxu3 %v3214_v57  ;;  %v3713_v56 = vld [vmem:[#allocation8 + $0x260] sm:$0xf]  ;;  %v4765_v57 = vld [vmem:[#allocation8 + $0x26c] sm:$0xf0]  ;;  %v3442_v1 = vor.u32 %v4697_v59, %v3441_v53 }
  0x64   :  { %v3841_v60 = vld [vmem:[#allocation8 + $0x360] sm:$0xf]  ;;  %v4729_v63 = vld [vmem:[#allocation8 + $0x14c] sm:$0xf0] }
  0x65   :  { %620 = vmatpush.bf16.msrb.mxu0 %v3170_v0  ;;  %633 = vmatpush.bf16.msrb.mxu1 %v3174_v3  ;;  %v3569_v62 = vld [vmem:[#allocation8 + $0x140] sm:$0xf]  ;;  %v3714_v0 = vor.u32 %v4765_v57, %v3713_v56  ;;  %v3842_v2 = vor.u32 %v4797_v61, %v3841_v60  ;;  %v4693_v7 = vld [vmem:[#allocation8 + $0x2c] sm:$0xf0] }
  0x66   :  { %646 = vmatpush.bf16.msrb.mxu2 %v3178_v4  ;;  %v3425_v3 = vld [vmem:[#allocation8 + $0x20] sm:$0xf]  ;;  %v4793_v9 = vld [vmem:[#allocation8 + $0x34c] sm:$0xf0] }
  0x67   :  { %659 = vmatpush.bf16.msrb.mxu3 %v3182_v5  ;;  %v3697_v4 = vld [vmem:[#allocation8 + $0x240] sm:$0xf]  ;;  %v4761_v5 = vld [vmem:[#allocation8 + $0x24c] sm:$0xf0]  ;;  %v3426_v14 = vor.u32 %v4693_v7, %v3425_v3 }
  0x68   :  { %621 = vmatmul.bf16.vlgmr.msrb.gmra.mxu0 %v5345_v50  ;;  %634 = vmatmul.bf16.vlgmr.msrb.gmra.mxu1 %v5345_v50  ;;  %v3825_v8 = vld [vmem:[#allocation8 + $0x340] sm:$0xf]  ;;  %v4725_v11 = vld [vmem:[#allocation8 + $0x12c] sm:$0xf0]  ;;  %v3698_v12 = vor.u32 %v4761_v5, %v3697_v4 }
  0x69   :  { %2227 = vmatpush.bf16.msra.mxu0 %v3522_v6  ;;  %2240 = vmatpush.bf16.msra.mxu1 %v3650_v10  ;;  %v3570_v6 = vor.u32 %v4729_v63, %v3569_v62  ;;  %v3553_v10 = vld [vmem:[#allocation8 + $0x120] sm:$0xf]  ;;  %v3826_v15 = vor.u32 %v4793_v9, %v3825_v8  ;;  %v4721_v23 = vld [vmem:[#allocation8 + $0x10c] sm:$0xf0] }
  0x6a   :  { %647 = vmatmul.bf16.vlgmr.msrb.gmra.mxu2 %v5345_v50  ;;  %660 = vmatmul.bf16.vlgmr.msrb.gmra.mxu3 %v5345_v50  ;;  %v4701_v50 = vld [vmem:[#allocation8 + $0x6c] sm:$0xf0]  ;;  %v3409_v13 = vld [vmem:[#allocation8] sm:$0xf]  ;;  %v3554_v19 = vor.u32 %v4725_v11, %v3553_v10 }
  0x6b   :  { %2253 = vmatpush.bf16.msra.mxu2 %v3778_v16  ;;  %2266 = vmatpush.bf16.msra.mxu3 %v3906_v18  ;;  %v3458_v54 = vor.u32 %v4701_v50, %v3457_v41  ;;  %v4689_v16 = vld [vmem:[#allocation8 + $0xc] sm:$0xf0]  ;;  %v3537_v20 = vld [vmem:[#allocation8 + $0x100] sm:$0xf] }
  0x6c   :  { %v4757_v18 = vld [vmem:[#allocation8 + $0x22c] sm:$0xf0]  ;;  %v3809_v21 = vld [vmem:[#allocation8 + $0x320] sm:$0xf]  ;;  %v3538_v35 = vor.u32 %v4721_v23, %v3537_v20 }
  0x6d   :  { %2228 = vmatpush.bf16.msra.mxu0 %v3506_v17  ;;  %2241 = vmatpush.bf16.msra.mxu1 %v3634_v22  ;;  %v3681_v17 = vld [vmem:[#allocation8 + $0x220] sm:$0xf]  ;;  %v4789_v22 = vld [vmem:[#allocation8 + $0x32c] sm:$0xf0] }
  0x6e   :  { %v4033_v24 = vld [vmem:[#allocation8 + $0x4e0] sm:$0xf]  ;;  %v4845_v25 = vld [vmem:[#allocation8 + $0x4ec] sm:$0xf0] }
  0x6f   :  { %2254 = vmatpush.bf16.msra.mxu2 %v3762_v28  ;;  %2267 = vmatpush.bf16.msra.mxu3 %v3890_v30  ;;  %v4161_v26 = vld [vmem:[#allocation8 + $0x5e0] sm:$0xf]  ;;  %v4877_v27 = vld [vmem:[#allocation8 + $0x5ec] sm:$0xf0]  ;;  %v3682_v28 = vor.u32 %v4757_v18, %v3681_v17  ;;  %v3810_v30 = vor.u32 %v4789_v22, %v3809_v21  ;;  %v4034_v36 = vor.u32 %v4845_v25, %v4033_v24 }
  0x70   :  { %v4017_v31 = vld [vmem:[#allocation8 + $0x4c0] sm:$0xf]  ;;  %v4753_v33 = vld [vmem:[#allocation8 + $0x20c] sm:$0xf0] }
  0x71   :  { %2229 = vmatpush.bf16.msra.mxu0 %v3490_v29  ;;  %2242 = vmatpush.bf16.msra.mxu1 %v3618_v34  ;;  %v3410_v29 = vor.u32 %v4689_v16, %v3409_v13  ;;  %v3665_v32 = vld [vmem:[#allocation8 + $0x200] sm:$0xf]  ;;  %v4785_v37 = vld [vmem:[#allocation8 + $0x30c] sm:$0xf0] }
  0x72   :  { %v3793_v34 = vld [vmem:[#allocation8 + $0x300] sm:$0xf]  ;;  %v4909_v39 = vld [vmem:[#allocation8 + $0x6ec] sm:$0xf0]  ;;  %v3666_v45 = vor.u32 %v4753_v33, %v3665_v32 }
  0x73   :  { %2255 = vmatpush.bf16.msra.mxu2 %v3746_v40  ;;  %2268 = vmatpush.bf16.msra.mxu3 %v3874_v43  ;;  %v4289_v38 = vld [vmem:[#allocation8 + $0x6e0] sm:$0xf]  ;;  %v4162_v40 = vor.u32 %v4877_v27, %v4161_v26  ;;  %v4841_v41 = vld [vmem:[#allocation8 + $0x4cc] sm:$0xf0] }
  0x74   :  { %v4417_v50 = vld [vmem:[#allocation8 + $0x7e0] sm:$0xf]  ;;  %v4873_v44 = vld [vmem:[#allocation8 + $0x5cc] sm:$0xf0]  ;;  %v4290_v47 = vor.u32 %v4909_v39, %v4289_v38  ;;  %v4018_v48 = vor.u32 %v4841_v41, %v4017_v31 }
  0x75   :  { %2230 = vmatpush.bf16.msra.mxu0 %v3474_v42  ;;  %2243 = vmatpush.bf16.msra.mxu1 %v3602_v46  ;;  %v4941_v42 = vld [vmem:[#allocation8 + $0x7ec] sm:$0xf0]  ;;  %v4145_v43 = vld [vmem:[#allocation8 + $0x5c0] sm:$0xf]  ;;  %v3794_v46 = vor.u32 %v4785_v37, %v3793_v34 }
  0x76   :  { %v4418_v49 = vor.u32 %v4941_v42, %v4417_v50  ;;  %v4001_v51 = vld [vmem:[#allocation8 + $0x4a0] sm:$0xf]  ;;  %v4905_v53 = vld [vmem:[#allocation8 + $0x6cc] sm:$0xf0] }
  0x77   :  { %2256 = vmatpush.bf16.msra.mxu2 %v3730_v52  ;;  %2269 = vmatpush.bf16.msra.mxu3 %v3858_v55  ;;  %v4273_v52 = vld [vmem:[#allocation8 + $0x6c0] sm:$0xf]  ;;  %v4837_v55 = vld [vmem:[#allocation8 + $0x4ac] sm:$0xf0] }
  0x78   :  { %v4401_v56 = vld [vmem:[#allocation8 + $0x7c0] sm:$0xf]  ;;  %v4937_v57 = vld [vmem:[#allocation8 + $0x7cc] sm:$0xf0]  ;;  %v4274_v60 = vor.u32 %v4905_v53, %v4273_v52  ;;  %v4002_v61 = vor.u32 %v4837_v55, %v4001_v51 }
  0x79   :  { %2231 = vmatpush.bf16.msra.mxu0 %v3458_v54  ;;  %2244 = vmatpush.bf16.msra.mxu1 %v3586_v58  ;;  %v4146_v54 = vor.u32 %v4873_v44, %v4145_v43  ;;  %v4129_v58 = vld [vmem:[#allocation8 + $0x5a0] sm:$0xf]  ;;  %v4869_v59 = vld [vmem:[#allocation8 + $0x5ac] sm:$0xf0]  ;;  %v4402_v62 = vor.u32 %v4937_v57, %v4401_v56 }
  0x7a   :  { %v3985_v63 = vld [vmem:[#allocation8 + $0x480] sm:$0xf]  ;;  %v4833_v3 = vld [vmem:[#allocation8 + $0x48c] sm:$0xf0] }
  0x7b   :  { %2257 = vmatpush.bf16.msra.mxu2 %v3714_v0  ;;  %2270 = vmatpush.bf16.msra.mxu3 %v3842_v2  ;;  %v4257_v0 = vld [vmem:[#allocation8 + $0x6a0] sm:$0xf]  ;;  %v4130_v2 = vor.u32 %v4869_v59, %v4129_v58  ;;  %v4933_v5 = vld [vmem:[#allocation8 + $0x7ac] sm:$0xf0]  ;;  %v3986_v9 = vor.u32 %v4833_v3, %v3985_v63 }
  0x7c   :  { %v4385_v4 = vld [vmem:[#allocation8 + $0x7a0] sm:$0xf]  ;;  %v4865_v7 = vld [vmem:[#allocation8 + $0x58c] sm:$0xf0] }
  0x7d   :  { %2232 = vmatpush.bf16.msra.mxu0 %v3442_v1  ;;  %2245 = vmatpush.bf16.msra.mxu1 %v3570_v6  ;;  %v4901_v1 = vld [vmem:[#allocation8 + $0x6ac] sm:$0xf0]  ;;  %v4113_v6 = vld [vmem:[#allocation8 + $0x580] sm:$0xf]  ;;  %v4386_v10 = vor.u32 %v4933_v5, %v4385_v4 }
  0x7e   :  { %v4258_v8 = vor.u32 %v4901_v1, %v4257_v0  ;;  %v3969_v11 = vld [vmem:[#allocation8 + $0x460] sm:$0xf]  ;;  %v4897_v13 = vld [vmem:[#allocation8 + $0x68c] sm:$0xf0] }
  0x7f   :  { %2258 = vmatpush.bf16.msra.mxu2 %v3698_v12  ;;  %2271 = vmatpush.bf16.msra.mxu3 %v3826_v15  ;;  %v4241_v12 = vld [vmem:[#allocation8 + $0x680] sm:$0xf]  ;;  %v4829_v15 = vld [vmem:[#allocation8 + $0x46c] sm:$0xf0] }
  0x80   :  { %v4369_v16 = vld [vmem:[#allocation8 + $0x780] sm:$0xf]  ;;  %v4929_v17 = vld [vmem:[#allocation8 + $0x78c] sm:$0xf0]  ;;  %v4242_v20 = vor.u32 %v4897_v13, %v4241_v12  ;;  %v3970_v21 = vor.u32 %v4829_v15, %v3969_v11  ;;  %v4747_v11 = vld [vmem:[#allocation8 + $0x1e4] sm:$0xf] }
  0x81   :  { %2233 = vmatpush.bf16.msra.mxu0 %v3426_v14  ;;  %2246 = vmatpush.bf16.msra.mxu1 %v3554_v19  ;;  %v4114_v14 = vor.u32 %v4865_v7, %v4113_v6  ;;  %v4097_v18 = vld [vmem:[#allocation8 + $0x560] sm:$0xf]  ;;  %v4861_v19 = vld [vmem:[#allocation8 + $0x56c] sm:$0xf0]  ;;  %v4370_v22 = vor.u32 %v4929_v17, %v4369_v16  ;;  %v3651_v12 = vld [vmem:[#allocation8 + $0x1f0] sm:$0xf0] }
  0x82   :  { %v4098_v23 = vor.u32 %v4861_v19, %v4097_v18  ;;  %v3953_v24 = vld [vmem:[#allocation8 + $0x440] sm:$0xf]  ;;  %v4825_v25 = vld [vmem:[#allocation8 + $0x44c] sm:$0xf0]  ;;  %v3654_v19 = vor.u32 %v4747_v11, %v3651_v12  ;;  %v4767_v11 = vld [vmem:[#allocation8 + $0x284] sm:$0xf] }
  0x83   :  { %2259 = vmatpush.bf16.msra.mxu2 %v3682_v28  ;;  %2272 = vmatpush.bf16.msra.mxu3 %v3810_v30  ;;  %v4081_v26 = vld [vmem:[#allocation8 + $0x540] sm:$0xf]  ;;  %v4857_v27 = vld [vmem:[#allocation8 + $0x54c] sm:$0xf0]  ;;  %v3954_v28 = vor.u32 %v4825_v25, %v3953_v24  ;;  %v3635_v24 = vld [vmem:[#allocation8 + $0x1d0] sm:$0xf0] }
  0x84   :  { %v4225_v30 = vld [vmem:[#allocation8 + $0x660] sm:$0xf]  ;;  %v4893_v31 = vld [vmem:[#allocation8 + $0x66c] sm:$0xf0]  ;;  %v3731_v12 = vld [vmem:[#allocation8 + $0x290] sm:$0xf0] }
  0x85   :  { %2234 = vmatpush.bf16.msra.mxu0 %v3410_v29  ;;  %2247 = vmatpush.bf16.msra.mxu1 %v3538_v35  ;;  %v4082_v29 = vor.u32 %v4857_v27, %v4081_v26  ;;  %v4353_v32 = vld [vmem:[#allocation8 + $0x760] sm:$0xf]  ;;  %v4226_v33 = vor.u32 %v4893_v31, %v4225_v30  ;;  %v4925_v34 = vld [vmem:[#allocation8 + $0x76c] sm:$0xf0]  ;;  %v4779_v30 = vld [vmem:[#allocation8 + $0x2e4] sm:$0xf] }
  0x86   :  { %v4354_v35 = vor.u32 %v4925_v34, %v4353_v32  ;;  %v4821_v37 = vld [vmem:[#allocation8 + $0x42c] sm:$0xf0]  ;;  %v4065_v39 = vld [vmem:[#allocation8 + $0x520] sm:$0xf]  ;;  %v3779_v31 = vld [vmem:[#allocation8 + $0x2f0] sm:$0xf0] }
  0x87   :  { %2260 = vmatpush.bf16.msra.mxu2 %v3666_v45  ;;  %2273 = vmatpush.bf16.msra.mxu3 %v3794_v46  ;;  %v4209_v50 = vld [vmem:[#allocation8 + $0x640] sm:$0xf]  ;;  %v4889_v42 = vld [vmem:[#allocation8 + $0x64c] sm:$0xf0]  ;;  %v4811_v32 = vld [vmem:[#allocation8 + $0x3e4] sm:$0xf] }
  0x88   :  { %v4337_v43 = vld [vmem:[#allocation8 + $0x740] sm:$0xf]  ;;  %v4210_v44 = vor.u32 %v4889_v42, %v4209_v50  ;;  %v4921_v45 = vld [vmem:[#allocation8 + $0x74c] sm:$0xf0]  ;;  %v3782_v42 = vor.u32 %v4779_v30, %v3779_v31  ;;  %v4691_v30 = vld [vmem:[#allocation8 + $0x24] sm:$0xf] }
  0x89   :  { %2279 = vmatpush.bf16.msrb.mxu0 %v4034_v36  ;;  %2292 = vmatpush.bf16.msrb.mxu1 %v4162_v40  ;;  %v3937_v36 = vld [vmem:[#allocation8 + $0x420] sm:$0xf]  ;;  %v4853_v40 = vld [vmem:[#allocation8 + $0x52c] sm:$0xf0]  ;;  %v4338_v46 = vor.u32 %v4921_v45, %v4337_v43  ;;  %v3427_v31 = vld [vmem:[#allocation8 + $0x30] sm:$0xf0] }
  0x8a   :  { %v3938_v38 = vor.u32 %v4821_v37, %v3937_v36  ;;  %v4066_v41 = vor.u32 %v4853_v40, %v4065_v39  ;;  %v4849_v52 = vld [vmem:[#allocation8 + $0x50c] sm:$0xf0]  ;;  %v4321_v57 = vld [vmem:[#allocation8 + $0x720] sm:$0xf]  ;;  %v3907_v36 = vld [vmem:[#allocation8 + $0x3f0] sm:$0xf0] }
  0x8b   :  { %2305 = vmatpush.bf16.msrb.mxu2 %v4290_v47  ;;  %2318 = vmatpush.bf16.msrb.mxu3 %v4418_v49  ;;  %v3921_v47 = vld [vmem:[#allocation8 + $0x400] sm:$0xf]  ;;  %v4885_v55 = vld [vmem:[#allocation8 + $0x62c] sm:$0xf0]  ;;  %v4707_v37 = vld [vmem:[#allocation8 + $0xa4] sm:$0xf] }
  0x8c   :  { %v4049_v49 = vld [vmem:[#allocation8 + $0x500] sm:$0xf]  ;;  %v4917_v58 = vld [vmem:[#allocation8 + $0x72c] sm:$0xf0]  ;;  %v4739_v40 = vld [vmem:[#allocation8 + $0x1a4] sm:$0xf] }
  0x8d   :  { %2280 = vmatpush.bf16.msrb.mxu0 %v4018_v48  ;;  %2293 = vmatpush.bf16.msrb.mxu1 %v4146_v54  ;;  %v4817_v48 = vld [vmem:[#allocation8 + $0x40c] sm:$0xf0]  ;;  %v4050_v53 = vor.u32 %v4849_v52, %v4049_v49  ;;  %v4193_v54 = vld [vmem:[#allocation8 + $0x620] sm:$0xf]  ;;  %v4322_v59 = vor.u32 %v4917_v58, %v4321_v57  ;;  %v3891_v52 = vld [vmem:[#allocation8 + $0x3d0] sm:$0xf0] }
  0x8e   :  { %v3922_v51 = vor.u32 %v4817_v48, %v3921_v47  ;;  %v4194_v56 = vor.u32 %v4885_v55, %v4193_v54  ;;  %v4305_v63 = vld [vmem:[#allocation8 + $0x700] sm:$0xf]  ;;  %v4913_v0 = vld [vmem:[#allocation8 + $0x70c] sm:$0xf0]  ;;  %v3763_v47 = vld [vmem:[#allocation8 + $0x2d0] sm:$0xf0] }
  0x8f   :  { %2306 = vmatpush.bf16.msrb.mxu2 %v4274_v60  ;;  %2319 = vmatpush.bf16.msrb.mxu3 %v4402_v62  ;;  %v4177_v60 = vld [vmem:[#allocation8 + $0x600] sm:$0xf]  ;;  %v4306_v1 = vor.u32 %v4913_v0, %v4305_v63  ;;  %v4807_v48 = vld [vmem:[#allocation8 + $0x3c4] sm:$0xf]  ;;  %v3475_v54 = vld [vmem:[#allocation8 + $0x90] sm:$0xf0] }
  0x90   :  { %v4735_v55 = vld [vmem:[#allocation8 + $0x184] sm:$0xf]  ;;  %v3747_v63 = vld [vmem:[#allocation8 + $0x2b0] sm:$0xf0] }
  0x91   :  { %2281 = vmatpush.bf16.msrb.mxu0 %v4002_v61  ;;  %2294 = vmatpush.bf16.msrb.mxu1 %v4130_v2  ;;  %v4881_v61 = vld [vmem:[#allocation8 + $0x60c] sm:$0xf0]  ;;  %v5355_v2 = vld [vmem:[#allocation7] sm:$0xff]  ;;  %v4803_v0 = vld [vmem:[#allocation8 + $0x3a4] sm:$0xf] }
  0x92   :  { %v4178_v62 = vor.u32 %v4881_v61, %v4177_v60  ;;  %v225_v3 = vperm.slane %v5355_v2, 0  ;;  %v226_v4 = vperm.slane %v5355_v2, 1  ;;  %v227_v15 = vperm.slane %v5355_v2, 2 }
  0x93   :  { %2307 = vmatpush.bf16.msrb.mxu2 %v4258_v8  ;;  %2320 = vmatpush.bf16.msrb.mxu3 %v4386_v10  ;;  %v4715_v8 = vld [vmem:[#allocation8 + $0xe4] sm:$0xf]  ;;  %v228_v18 = vperm.slane %v5355_v2, 3  ;;  %v3894_v60 = vor.u32 %v4807_v48, %v3891_v52  ;;  %v3539_v52 = vld [vmem:[#allocation8 + $0x110] sm:$0xf0] }
  0x95   :  { %2282 = vmatpush.bf16.msrb.mxu0 %v3986_v9  ;;  %2295 = vmatpush.bf16.msrb.mxu1 %v4114_v14  ;;  %v3523_v9 = vld [vmem:[#allocation8 + $0xf0] sm:$0xf0] }
  0x96   :  { %v3526_v16 = vor.u32 %v4715_v8, %v3523_v9 }
  0x97   :  { %2308 = vmatpush.bf16.msrb.mxu2 %v4242_v20  ;;  %2321 = vmatpush.bf16.msrb.mxu3 %v4370_v22  ;;  %v4711_v20 = vld [vmem:[#allocation8 + $0xc4] sm:$0xf] }
  0x99   :  { %2283 = vmatpush.bf16.msrb.mxu0 %v3970_v21  ;;  %2296 = vmatpush.bf16.msrb.mxu1 %v4098_v23  ;;  %v3507_v21 = vld [vmem:[#allocation8 + $0xd0] sm:$0xf0]  ;;  %v4743_v23 = vld [vmem:[#allocation8 + $0x1c4] sm:$0xf] }
  0x9b   :  { %2309 = vmatpush.bf16.msrb.mxu2 %v4226_v33  ;;  %2322 = vmatpush.bf16.msrb.mxu3 %v4354_v35  ;;  %v3638_v35 = vor.u32 %v4743_v23, %v3635_v24 }
  0x9d   :  { %2284 = vmatpush.bf16.msrb.mxu0 %v3954_v28  ;;  %2297 = vmatpush.bf16.msrb.mxu1 %v4082_v29  ;;  %v3510_v29 = vor.u32 %v4711_v20, %v3507_v21  ;;  %v3571_v20 = vld [vmem:[#allocation8 + $0x150] sm:$0xf0]  ;;  %v3734_v21 = vor.u32 %v4767_v11, %v3731_v12  ;;  %v4839_v12 = vld [vmem:[#allocation8 + $0x4c4] sm:$0xf] }
  0x9f   :  { %2310 = vmatpush.bf16.msrb.mxu2 %v4210_v44  ;;  %2323 = vmatpush.bf16.msrb.mxu3 %v4338_v46  ;;  %v3910_v44 = vor.u32 %v4811_v32, %v3907_v36  ;;  %v4775_v46 = vld [vmem:[#allocation8 + $0x2c4] sm:$0xf]  ;;  %v229_v32 = vperm.slane %v5355_v2, 4 }
  0xa0   :  { %v3766_v58 = vor.u32 %v4775_v46, %v3763_v47  ;;  %v3411_v46 = vld [vmem:[#allocation8 + $0x10] sm:$0xf0] }
  0xa1   :  { %2285 = vmatpush.bf16.msrb.mxu0 %v3938_v38  ;;  %2298 = vmatpush.bf16.msrb.mxu1 %v4066_v41  ;;  %v3491_v38 = vld [vmem:[#allocation8 + $0xb0] sm:$0xf0] }
  0xa2   :  { %v3619_v41 = vld [vmem:[#allocation8 + $0x1b0] sm:$0xf0]  ;;  %v3494_v45 = vor.u32 %v4707_v37, %v3491_v38  ;;  %v3430_v38 = vor.u32 %v4691_v30, %v3427_v31  ;;  %v4939_v31 = vld [vmem:[#allocation8 + $0x7e4] sm:$0xf] }
  0xa3   :  { %2311 = vmatpush.bf16.msrb.mxu2 %v4194_v56  ;;  %2324 = vmatpush.bf16.msrb.mxu3 %v4322_v59  ;;  %v3603_v56 = vld [vmem:[#allocation8 + $0x190] sm:$0xf0] }
  0xa4   :  { %v4291_v30 = vld [vmem:[#allocation8 + $0x6f0] sm:$0xf0] }
  0xa5   :  { %2286 = vmatpush.bf16.msrb.mxu0 %v3922_v51  ;;  %2299 = vmatpush.bf16.msrb.mxu1 %v4050_v53  ;;  %v3622_v51 = vor.u32 %v4739_v40, %v3619_v41  ;;  %v4703_v53 = vld [vmem:[#allocation8 + $0x84] sm:$0xf]  ;;  %v3699_v40 = vld [vmem:[#allocation8 + $0x250] sm:$0xf0] }
  0xa6   :  { %v3478_v61 = vor.u32 %v4703_v53, %v3475_v54  ;;  %v4791_v41 = vld [vmem:[#allocation8 + $0x344] sm:$0xf] }
  0xa7   :  { %2312 = vmatpush.bf16.msrb.mxu2 %v4178_v62  ;;  %2325 = vmatpush.bf16.msrb.mxu3 %v4306_v1  ;;  %v4771_v62 = vld [vmem:[#allocation8 + $0x2a4] sm:$0xf]  ;;  %v3606_v1 = vor.u32 %v4735_v55, %v3603_v56  ;;  %v4035_v56 = vld [vmem:[#allocation8 + $0x4f0] sm:$0xf0] }
  0xa8   :  { %v3750_v8 = vor.u32 %v4771_v62, %v3747_v63  ;;  %v4843_v53 = vld [vmem:[#allocation8 + $0x4e4] sm:$0xf]  ;;  %v3683_v63 = vld [vmem:[#allocation8 + $0x230] sm:$0xf0] }
  0xa9   :  { %v4755_v62 = vld [vmem:[#allocation8 + $0x224] sm:$0xf] }
  0xaa   :  { %v3686_v11 = vor.u32 %v4755_v62, %v3683_v63  ;;  %v4899_v63 = vld [vmem:[#allocation8 + $0x6a4] sm:$0xf] }
  0xc5   :  { %v570_v5 = vpop.f32.mrf.mxu0  ;;  %v583_v7 = vpop.f32.mrf.mxu1 }
  0xc6   :  { %v571_v6 = vadd.f32 %v570_v5, %v225_v3  ;;  %v584_v10 = vadd.f32 %v583_v7, %v226_v4  ;;  %v3875_v3 = vld [vmem:[#allocation8 + $0x3b0] sm:$0xf0]  ;;  %v4699_v4 = vld [vmem:[#allocation8 + $0x64] sm:$0xf] }
  0xc7   :  { %v3459_v5 = vld [vmem:[#allocation8 + $0x70] sm:$0xf0]  ;;  %v3878_v9 = vor.u32 %v4803_v0, %v3875_v3 }
  0xc8   :  { %v665_v13 = vmax.f32 %v571_v6, 0.0  ;;  %v666_v14 = vmax.f32 %v584_v10, 0.0  ;;  %v4731_v6 = vld [vmem:[#allocation8 + $0x164] sm:$0xf]  ;;  %v3587_v7 = vld [vmem:[#allocation8 + $0x170] sm:$0xf0]  ;;  %v3462_v10 = vor.u32 %v4699_v4, %v3459_v5 }
  0xc9   :  { %v4787_v4 = vld [vmem:[#allocation8 + $0x324] sm:$0xf]  ;;  %v3811_v5 = vld [vmem:[#allocation8 + $0x330] sm:$0xf0] }
  0xca   :  { %v5360_v17 = vpack.c.bf16 %v665_v13, %v665_v13  ;;  %v5363_v22 = vpack.c.bf16 %v666_v14, %v666_v14  ;;  %v4799_v13 = vld [vmem:[#allocation8 + $0x384] sm:$0xf]  ;;  %v3590_v14 = vor.u32 %v4731_v6, %v3587_v7  ;;  %v232_v7 = vperm.slane %v5355_v2, 7 }
  0xcc   :  { %2235 = vmatmul.bf16.vlgmr.msra.gmra.mxu0 %v5360_v17  ;;  %2248 = vmatmul.bf16.vlgmr.msra.gmra.mxu1 %v5363_v22 }
  0xcd   :  { %v609_v27 = vpop.f32.mrf.mxu3  ;;  %2331 = vmatpush.bf16.msra.mxu0 %v3526_v16  ;;  %v572_v28 = vpop.f32.mrf.mxu0  ;;  %2344 = vmatpush.bf16.msra.mxu1 %v3654_v19  ;;  %v4695_v16 = vld [vmem:[#allocation8 + $0x44] sm:$0xf] }
  0xce   :  { %v596_v25 = vpop.f32.mrf.mxu2  ;;  %v610_v33 = vadd.f32 %v609_v27, %v228_v18  ;;  %v585_v34 = vpop.f32.mrf.mxu1  ;;  %v3443_v18 = vld [vmem:[#allocation8 + $0x50] sm:$0xf0]  ;;  %v4727_v19 = vld [vmem:[#allocation8 + $0x144] sm:$0xf] }
  0xcf   :  { %v597_v26 = vadd.f32 %v596_v25, %v227_v15  ;;  %v3859_v15 = vld [vmem:[#allocation8 + $0x390] sm:$0xf0]  ;;  %v3446_v24 = vor.u32 %v4695_v16, %v3443_v18  ;;  %v4763_v25 = vld [vmem:[#allocation8 + $0x264] sm:$0xf]  ;;  %v3574_v28 = vor.u32 %v4727_v19, %v3571_v20  ;;  %v3814_v16 = vor.u32 %v4787_v4, %v3811_v5 }
  0xd0   :  { %v668_v50 = vmax.f32 %v610_v33, 0.0  ;;  %v3862_v23 = vor.u32 %v4799_v13, %v3859_v15  ;;  %v4795_v27 = vld [vmem:[#allocation8 + $0x364] sm:$0xf]  ;;  %v3555_v34 = vld [vmem:[#allocation8 + $0x130] sm:$0xf0] }
  0xd1   :  { %v667_v39 = vmax.f32 %v597_v26, 0.0  ;;  %2332 = vmatpush.bf16.msra.mxu0 %v3510_v29  ;;  %2345 = vmatpush.bf16.msra.mxu1 %v3638_v35  ;;  %v3715_v26 = vld [vmem:[#allocation8 + $0x270] sm:$0xf0]  ;;  %v4723_v33 = vld [vmem:[#allocation8 + $0x124] sm:$0xf]  ;;  %v230_v35 = vperm.slane %v5355_v2, 5 }
  0xd2   :  { %v5369_v49 = vpack.c.bf16 %v668_v50, %v668_v50  ;;  %v3843_v29 = vld [vmem:[#allocation8 + $0x370] sm:$0xf0]  ;;  %v3718_v36 = vor.u32 %v4763_v25, %v3715_v26  ;;  %v4751_v19 = vld [vmem:[#allocation8 + $0x204] sm:$0xf] }
  0xd3   :  { %v5367_v43 = vpack.c.bf16 %v667_v39, %v667_v39  ;;  %v3846_v37 = vor.u32 %v4795_v27, %v3843_v29  ;;  %v4759_v39 = vld [vmem:[#allocation8 + $0x244] sm:$0xf]  ;;  %v4019_v13 = vld [vmem:[#allocation8 + $0x4d0] sm:$0xf0] }
  0xd4   :  { %2274 = vmatmul.bf16.vlgmr.msra.gmra.mxu3 %v5369_v49  ;;  %v3702_v55 = vor.u32 %v4759_v39, %v3699_v40  ;;  %v4147_v18 = vld [vmem:[#allocation8 + $0x5d0] sm:$0xf0]  ;;  %v4907_v26 = vld [vmem:[#allocation8 + $0x6e4] sm:$0xf]  ;;  %v4022_v29 = vor.u32 %v4839_v12, %v4019_v13 }
  0xd5   :  { %2261 = vmatmul.bf16.vlgmr.msra.gmra.mxu2 %v5367_v43  ;;  %2370 = vmatpush.bf16.msra.mxu3 %v3910_v44  ;;  %v611_v59 = vpop.f32.mrf.mxu3  ;;  %v3827_v44 = vld [vmem:[#allocation8 + $0x350] sm:$0xf0]  ;;  %v4867_v40 = vld [vmem:[#allocation8 + $0x5a4] sm:$0xf] }
  0xd6   :  { %2357 = vmatpush.bf16.msra.mxu2 %v3782_v42  ;;  %v598_v57 = vpop.f32.mrf.mxu2  ;;  %2333 = vmatpush.bf16.msra.mxu0 %v3494_v45  ;;  %v3558_v42 = vor.u32 %v4723_v33, %v3555_v34  ;;  %v4687_v45 = vld [vmem:[#allocation8 + $0x4] sm:$0xf]  ;;  %v3667_v20 = vld [vmem:[#allocation8 + $0x210] sm:$0xf0] }
  0xd7   :  { %2346 = vmatpush.bf16.msra.mxu1 %v3622_v51  ;;  %v4719_v51 = vld [vmem:[#allocation8 + $0x104] sm:$0xf]  ;;  %v3795_v25 = vld [vmem:[#allocation8 + $0x310] sm:$0xf0] }
  0xd8   :  { %v4875_v57 = vld [vmem:[#allocation8 + $0x5e4] sm:$0xf]  ;;  %v3542_v3 = vor.u32 %v4719_v51, %v3539_v52  ;;  %v4387_v4 = vld [vmem:[#allocation8 + $0x7b0] sm:$0xf0] }
  0xd9   :  { %2371 = vmatpush.bf16.msra.mxu3 %v3894_v60  ;;  %v3830_v60 = vor.u32 %v4791_v41, %v3827_v44  ;;  %v4131_v41 = vld [vmem:[#allocation8 + $0x5b0] sm:$0xf0]  ;;  %v4935_v51 = vld [vmem:[#allocation8 + $0x7c4] sm:$0xf] }
  0xda   :  { %2358 = vmatpush.bf16.msra.mxu2 %v3766_v58  ;;  %2334 = vmatpush.bf16.msra.mxu0 %v3478_v61  ;;  %v4163_v58 = vld [vmem:[#allocation8 + $0x5f0] sm:$0xf0]  ;;  %v3414_v61 = vor.u32 %v4687_v45, %v3411_v46  ;;  %v4134_v52 = vor.u32 %v4867_v40, %v4131_v41  ;;  %v4827_v5 = vld [vmem:[#allocation8 + $0x464] sm:$0xf] }
  0xdb   :  { %2347 = vmatpush.bf16.msra.mxu1 %v3606_v1  ;;  %v231_v1 = vperm.slane %v5355_v2, 6  ;;  %v4895_v13 = vld [vmem:[#allocation8 + $0x684] sm:$0xf] }
  0xdc   :  { %v4919_v40 = vld [vmem:[#allocation8 + $0x744] sm:$0xf] }
  0xdd   :  { %2372 = vmatpush.bf16.msra.mxu3 %v3878_v9 }
  0xde   :  { %2359 = vmatpush.bf16.msra.mxu2 %v3750_v8  ;;  %2335 = vmatpush.bf16.msra.mxu0 %v3462_v10  ;;  %v4038_v8 = vor.u32 %v4843_v53, %v4035_v56  ;;  %v4166_v10 = vor.u32 %v4875_v57, %v4163_v58  ;;  %v4403_v53 = vld [vmem:[#allocation8 + $0x7d0] sm:$0xf0]  ;;  %v4863_v57 = vld [vmem:[#allocation8 + $0x584] sm:$0xf] }
  0xdf   :  { %2348 = vmatpush.bf16.msra.mxu1 %v3590_v14  ;;  %v4871_v14 = vld [vmem:[#allocation8 + $0x5c4] sm:$0xf]  ;;  %v4115_v58 = vld [vmem:[#allocation8 + $0x590] sm:$0xf0] }
  0xe0   :  { %v4150_v34 = vor.u32 %v4871_v14, %v4147_v18  ;;  %v4243_v14 = vld [vmem:[#allocation8 + $0x690] sm:$0xf0]  ;;  %v4927_v18 = vld [vmem:[#allocation8 + $0x784] sm:$0xf] }
  0xe1   :  { %2373 = vmatpush.bf16.msra.mxu3 %v3862_v23 }
  0xe2   :  { %2360 = vmatpush.bf16.msra.mxu2 %v3734_v21  ;;  %2336 = vmatpush.bf16.msra.mxu0 %v3446_v24  ;;  %v4783_v24 = vld [vmem:[#allocation8 + $0x304] sm:$0xf] }
  0xe3   :  { %2349 = vmatpush.bf16.msra.mxu1 %v3574_v28  ;;  %v3798_v39 = vor.u32 %v4783_v24, %v3795_v25  ;;  %v4246_v24 = vor.u32 %v4895_v13, %v4243_v14  ;;  %v4911_v13 = vld [vmem:[#allocation8 + $0x704] sm:$0xf]  ;;  %v4307_v14 = vld [vmem:[#allocation8 + $0x710] sm:$0xf0] }
  0xe5   :  { %v622_v50 = vpop.f32.mrf.mxu0  ;;  %v635_v48 = vpop.f32.mrf.mxu1  ;;  %2374 = vmatpush.bf16.msra.mxu3 %v3846_v37  ;;  %v4003_v37 = vld [vmem:[#allocation8 + $0x4b0] sm:$0xf0] }
  0xe6   :  { %v623_v47 = vadd.f32 %v622_v50, %v229_v32  ;;  %v636_v54 = vadd.f32 %v635_v48, %v230_v35  ;;  %2361 = vmatpush.bf16.msra.mxu2 %v3718_v36  ;;  %2337 = vmatpush.bf16.msra.mxu0 %v3430_v38  ;;  %v4419_v32 = vld [vmem:[#allocation8 + $0x7f0] sm:$0xf0]  ;;  %v3670_v35 = vor.u32 %v4751_v19, %v3667_v20  ;;  %v4835_v36 = vld [vmem:[#allocation8 + $0x4a4] sm:$0xf] }
  0xe7   :  { %2350 = vmatpush.bf16.msra.mxu1 %v3558_v42  ;;  %v4294_v42 = vor.u32 %v4907_v26, %v4291_v30  ;;  %v4422_v45 = vor.u32 %v4939_v31, %v4419_v32  ;;  %v4006_v46 = vor.u32 %v4835_v36, %v4003_v37  ;;  %v4275_v48 = vld [vmem:[#allocation8 + $0x6d0] sm:$0xf0]  ;;  %v4823_v20 = vld [vmem:[#allocation8 + $0x444] sm:$0xf] }
  0xe8   :  { %v669_v59 = vmax.f32 %v623_v47, 0.0  ;;  %v670_v0 = vmax.f32 %v636_v54, 0.0  ;;  %v4903_v47 = vld [vmem:[#allocation8 + $0x6c4] sm:$0xf]  ;;  %v4371_v19 = vld [vmem:[#allocation8 + $0x790] sm:$0xf0] }
  0xe9   :  { %2375 = vmatpush.bf16.msra.mxu3 %v3830_v60  ;;  %v4831_v54 = vld [vmem:[#allocation8 + $0x484] sm:$0xf]  ;;  %v4278_v60 = vor.u32 %v4903_v47, %v4275_v48  ;;  %v4374_v25 = vor.u32 %v4927_v18, %v4371_v19  ;;  %v4355_v31 = vld [vmem:[#allocation8 + $0x770] sm:$0xf0] }
  0xea   :  { %v5376_v6 = vpack.c.bf16 %v669_v59, %v669_v59  ;;  %v5379_v9 = vpack.c.bf16 %v670_v0, %v670_v0  ;;  %2362 = vmatpush.bf16.msra.mxu2 %v3702_v55  ;;  %2338 = vmatpush.bf16.msra.mxu0 %v3414_v61  ;;  %v3987_v55 = vld [vmem:[#allocation8 + $0x490] sm:$0xf0]  ;;  %v4406_v61 = vor.u32 %v4935_v51, %v4403_v53  ;;  %v4891_v26 = vld [vmem:[#allocation8 + $0x664] sm:$0xf] }
  0xeb   :  { %2351 = vmatpush.bf16.msra.mxu1 %v3542_v3  ;;  %v3990_v62 = vor.u32 %v4831_v54, %v3987_v55  ;;  %v4259_v0 = vld [vmem:[#allocation8 + $0x6b0] sm:$0xf0]  ;;  %v4931_v3 = vld [vmem:[#allocation8 + $0x7a4] sm:$0xf]  ;;  %v4718_v54 = vld [vmem:[#allocation8 + $0xf4] sm:$0xf0] }
  0xec   :  { %2287 = vmatmul.bf16.vlgmr.msrb.gmra.mxu0 %v5376_v6  ;;  %2300 = vmatmul.bf16.vlgmr.msrb.gmra.mxu1 %v5379_v9  ;;  %v4390_v12 = vor.u32 %v4931_v3, %v4387_v4  ;;  %v4923_v30 = vld [vmem:[#allocation8 + $0x764] sm:$0xf]  ;;  %v3923_v47 = vld [vmem:[#allocation8 + $0x410] sm:$0xf0]  ;;  %v3657_v55 = vld [vmem:[#allocation8 + $0x1e8] sm:$0xf] }
  0xed   :  { %v648_v15 = vpop.f32.mrf.mxu2  ;;  %v661_v23 = vpop.f32.mrf.mxu3  ;;  %2376 = vmatpush.bf16.msra.mxu3 %v3814_v16  ;;  %v4819_v32 = vld [vmem:[#allocation8 + $0x424] sm:$0xf]  ;;  %v4358_v37 = vor.u32 %v4923_v30, %v4355_v31  ;;  %v4051_v51 = vld [vmem:[#allocation8 + $0x510] sm:$0xf0]  ;;  %v3513_v3 = vld [vmem:[#allocation8 + $0xc8] sm:$0xf] }
  0xee   :  { %v649_v21 = vadd.f32 %v648_v15, %v231_v1  ;;  %v624_v2 = vpop.f32.mrf.mxu0  ;;  %v662_v27 = vadd.f32 %v661_v23, %v232_v7  ;;  %2383 = vmatpush.bf16.msrb.mxu0 %v4038_v8  ;;  %v637_v28 = vpop.f32.mrf.mxu1  ;;  %2363 = vmatpush.bf16.msra.mxu2 %v3686_v11  ;;  %v4118_v1 = vor.u32 %v4863_v57, %v4115_v58  ;;  %v3971_v7 = vld [vmem:[#allocation8 + $0x470] sm:$0xf0]  ;;  %v4859_v8 = vld [vmem:[#allocation8 + $0x564] sm:$0xf]  ;;  %v3769_v30 = vld [vmem:[#allocation8 + $0x2c8] sm:$0xf] }
  0xef   :  { %2396 = vmatpush.bf16.msrb.mxu1 %v4166_v10  ;;  %v4099_v10 = vld [vmem:[#allocation8 + $0x570] sm:$0xf0]  ;;  %v4262_v11 = vor.u32 %v4899_v63, %v4259_v0  ;;  %v3974_v15 = vor.u32 %v4827_v5, %v3971_v7  ;;  %v4855_v23 = vld [vmem:[#allocation8 + $0x544] sm:$0xf]  ;;  %v4714_v5 = vld [vmem:[#allocation8 + $0xd4] sm:$0xf0] }
  0xf0   :  { %v671_v33 = vmax.f32 %v649_v21, 0.0  ;;  %v672_v38 = vmax.f32 %v662_v27, 0.0  ;;  %v4102_v16 = vor.u32 %v4859_v8, %v4099_v10  ;;  %v3955_v21 = vld [vmem:[#allocation8 + $0x450] sm:$0xf0]  ;;  %v4847_v48 = vld [vmem:[#allocation8 + $0x504] sm:$0xf]  ;;  %v3514_v18 = vor.u32 %v4714_v5, %v3513_v3 }
  0xf1   :  { %2377 = vmatpush.bf16.msra.mxu3 %v3798_v39  ;;  %v4083_v2 = vld [vmem:[#allocation8 + $0x550] sm:$0xf0]  ;;  %v3958_v28 = vor.u32 %v4823_v20, %v3955_v21  ;;  %v4883_v58 = vld [vmem:[#allocation8 + $0x624] sm:$0xf]  ;;  %v3641_v7 = vld [vmem:[#allocation8 + $0x1c8] sm:$0xf] }
  0xf2   :  { %v5383_v50 = vpack.c.bf16 %v671_v33, %v671_v33  ;;  %v5385_v44 = vpack.c.bf16 %v672_v38, %v672_v38  ;;  %2384 = vmatpush.bf16.msrb.mxu0 %v4022_v29  ;;  %2364 = vmatpush.bf16.msra.mxu2 %v3670_v35  ;;  %v4227_v27 = vld [vmem:[#allocation8 + $0x670] sm:$0xf0]  ;;  %v4086_v29 = vor.u32 %v4855_v23, %v4083_v2  ;;  %v4887_v38 = vld [vmem:[#allocation8 + $0x644] sm:$0xf]  ;;  %v4746_v8 = vld [vmem:[#allocation8 + $0x1d4] sm:$0xf0] }
  0xf3   :  { %2397 = vmatpush.bf16.msrb.mxu1 %v4150_v34  ;;  %v3939_v33 = vld [vmem:[#allocation8 + $0x430] sm:$0xf0]  ;;  %v4851_v34 = vld [vmem:[#allocation8 + $0x524] sm:$0xf]  ;;  %v4230_v36 = vor.u32 %v4891_v26, %v4227_v27  ;;  %v3642_v19 = vor.u32 %v4746_v8, %v3641_v7  ;;  %v3913_v20 = vld [vmem:[#allocation8 + $0x3e8] sm:$0xf]  ;;  %v4310_v27 = vor.u32 %v4911_v13, %v4307_v14 }
  0xf4   :  { %2313 = vmatmul.bf16.vlgmr.msrb.gmra.mxu2 %v5383_v50  ;;  %2326 = vmatmul.bf16.vlgmr.msrb.gmra.mxu3 %v5385_v44  ;;  %v4067_v35 = vld [vmem:[#allocation8 + $0x530] sm:$0xf0]  ;;  %v3942_v41 = vor.u32 %v4819_v32, %v3939_v33  ;;  %v4814_v21 = vld [vmem:[#allocation8 + $0x3f4] sm:$0xf0]  ;;  %v3497_v23 = vld [vmem:[#allocation8 + $0xa8] sm:$0xf] }
  0xf5   :  { %v650_v56 = vpop.f32.mrf.mxu2  ;;  %v663_v59 = vpop.f32.mrf.mxu3  ;;  %2422 = vmatpush.bf16.msrb.mxu3 %v4422_v45  ;;  %v4211_v39 = vld [vmem:[#allocation8 + $0x650] sm:$0xf0]  ;;  %v4742_v26 = vld [vmem:[#allocation8 + $0x1b4] sm:$0xf0]  ;;  %v3577_v3 = vld [vmem:[#allocation8 + $0x148] sm:$0xf] }
  0xf6   :  { %2409 = vmatpush.bf16.msrb.mxu2 %v4294_v42  ;;  %2385 = vmatpush.bf16.msrb.mxu0 %v4006_v46  ;;  %v4070_v42 = vor.u32 %v4851_v34, %v4067_v35  ;;  %v4339_v45 = vld [vmem:[#allocation8 + $0x750] sm:$0xf0]  ;;  %v4815_v46 = vld [vmem:[#allocation8 + $0x404] sm:$0xf]  ;;  %v4214_v53 = vor.u32 %v4887_v38, %v4211_v39  ;;  %v4750_v56 = vld [vmem:[#allocation8 + $0x1f4] sm:$0xf0] }
  0xf7   :  { %2398 = vmatpush.bf16.msrb.mxu1 %v4134_v52  ;;  %v3529_v52 = vld [vmem:[#allocation8 + $0xe8] sm:$0xf]  ;;  %v4342_v57 = vor.u32 %v4919_v40, %v4339_v45  ;;  %v4195_v59 = vld [vmem:[#allocation8 + $0x630] sm:$0xf0]  ;;  %v4778_v31 = vld [vmem:[#allocation8 + $0x2d4] sm:$0xf0] }
  0xf8   :  { %v4323_v63 = vld [vmem:[#allocation8 + $0x730] sm:$0xf0]  ;;  %v3530_v0 = vor.u32 %v4718_v54, %v3529_v52  ;;  %v4198_v4 = vor.u32 %v4883_v58, %v4195_v59  ;;  %v3897_v34 = vld [vmem:[#allocation8 + $0x3c8] sm:$0xf]  ;;  %v4810_v35 = vld [vmem:[#allocation8 + $0x3d4] sm:$0xf0]  ;;  %v3770_v40 = vor.u32 %v4778_v31, %v3769_v30 }
  0xf9   :  { %2423 = vmatpush.bf16.msrb.mxu3 %v4406_v61  ;;  %v4054_v61 = vor.u32 %v4847_v48, %v4051_v51  ;;  %v3609_v38 = vld [vmem:[#allocation8 + $0x188] sm:$0xf]  ;;  %v4738_v39 = vld [vmem:[#allocation8 + $0x194] sm:$0xf0] }
  0xfa   :  { %2410 = vmatpush.bf16.msrb.mxu2 %v4278_v60  ;;  %2386 = vmatpush.bf16.msrb.mxu0 %v3990_v62  ;;  %v3926_v60 = vor.u32 %v4815_v46, %v3923_v47  ;;  %v4915_v62 = vld [vmem:[#allocation8 + $0x724] sm:$0xf]  ;;  %v4774_v45 = vld [vmem:[#allocation8 + $0x2b4] sm:$0xf0]  ;;  %v3610_v47 = vor.u32 %v4738_v39, %v3609_v38  ;;  %v3881_v48 = vld [vmem:[#allocation8 + $0x3a8] sm:$0xf] }
  0xfb   :  { %2399 = vmatpush.bf16.msrb.mxu1 %v4118_v1  ;;  %v3658_v1 = vor.u32 %v4750_v56, %v3657_v55  ;;  %v4326_v10 = vor.u32 %v4915_v62, %v4323_v63  ;;  %v4806_v51 = vld [vmem:[#allocation8 + $0x3b4] sm:$0xf0]  ;;  %v3465_v52 = vld [vmem:[#allocation8 + $0x68] sm:$0xf] }
  0xfc   :  { %2339 = vmatmul.bf16.vlgmr.msra.gmra.mxu0 %v5360_v17  ;;  %2352 = vmatmul.bf16.vlgmr.msra.gmra.mxu1 %v5363_v22  ;;  %v3593_v54 = vld [vmem:[#allocation8 + $0x168] sm:$0xf]  ;;  %v4734_v55 = vld [vmem:[#allocation8 + $0x174] sm:$0xf0] }
  0xfd   :  { %2424 = vmatpush.bf16.msrb.mxu3 %v4390_v12  ;;  %v4179_v12 = vld [vmem:[#allocation8 + $0x610] sm:$0xf0]  ;;  %v3737_v58 = vld [vmem:[#allocation8 + $0x288] sm:$0xf]  ;;  %v4770_v59 = vld [vmem:[#allocation8 + $0x294] sm:$0xf0] }
  0xfe   :  { %2411 = vmatpush.bf16.msrb.mxu2 %v4262_v11  ;;  %2387 = vmatpush.bf16.msrb.mxu0 %v3974_v15  ;;  %v4879_v11 = vld [vmem:[#allocation8 + $0x604] sm:$0xf]  ;;  %v3785_v15 = vld [vmem:[#allocation8 + $0x2e8] sm:$0xf]  ;;  %v4802_v63 = vld [vmem:[#allocation8 + $0x394] sm:$0xf0]  ;;  %v3738_v5 = vor.u32 %v4770_v59, %v3737_v58 }
  0xff   :  { %2400 = vmatpush.bf16.msrb.mxu1 %v4102_v16  ;;  %v4782_v16 = vld [vmem:[#allocation8 + $0x2f4] sm:$0xf0]  ;;  %v4182_v2 = vor.u32 %v4879_v11, %v4179_v12  ;;  %v3865_v62 = vld [vmem:[#allocation8 + $0x388] sm:$0xf] }
 0x100   :  { %v3866_v7 = vor.u32 %v4802_v63, %v3865_v62  ;;  %v3721_v8 = vld [vmem:[#allocation8 + $0x268] sm:$0xf]  ;;  %v4798_v14 = vld [vmem:[#allocation8 + $0x374] sm:$0xf0] }
 0x101   :  { %2425 = vmatpush.bf16.msrb.mxu3 %v4374_v25  ;;  %v3625_v25 = vld [vmem:[#allocation8 + $0x1a8] sm:$0xf]  ;;  %v4722_v31 = vld [vmem:[#allocation8 + $0x114] sm:$0xf0] }
 0x102   :  { %2412 = vmatpush.bf16.msrb.mxu2 %v4246_v24  ;;  %2388 = vmatpush.bf16.msrb.mxu0 %v3958_v28  ;;  %v4710_v24 = vld [vmem:[#allocation8 + $0xb4] sm:$0xf0]  ;;  %v3786_v28 = vor.u32 %v4782_v16, %v3785_v15  ;;  %v3626_v33 = vor.u32 %v4742_v26, %v3625_v25  ;;  %v3849_v13 = vld [vmem:[#allocation8 + $0x368] sm:$0xf] }
 0x103   :  { %2401 = vmatpush.bf16.msrb.mxu1 %v4086_v29  ;;  %v3914_v29 = vor.u32 %v4814_v21, %v3913_v20  ;;  %v3498_v32 = vor.u32 %v4710_v24, %v3497_v23  ;;  %v3433_v15 = vld [vmem:[#allocation8 + $0x28] sm:$0xf]  ;;  %v4694_v16 = vld [vmem:[#allocation8 + $0x34] sm:$0xf0]  ;;  %v3850_v21 = vor.u32 %v4798_v14, %v3849_v13 }
 0x104   :  { %2365 = vmatmul.bf16.vlgmr.msra.gmra.mxu2 %v5367_v43  ;;  %2378 = vmatmul.bf16.vlgmr.msra.gmra.mxu3 %v5369_v49  ;;  %v3705_v23 = vld [vmem:[#allocation8 + $0x248] sm:$0xf]  ;;  %v3434_v25 = vor.u32 %v4694_v16, %v3433_v15  ;;  %v4758_v39 = vld [vmem:[#allocation8 + $0x234] sm:$0xf0] }
 0x105   :  { %2426 = vmatpush.bf16.msrb.mxu3 %v4358_v37  ;;  %v4706_v37 = vld [vmem:[#allocation8 + $0x94] sm:$0xf0]  ;;  %v3833_v24 = vld [vmem:[#allocation8 + $0x348] sm:$0xf] }
 0x106   :  { %2413 = vmatpush.bf16.msrb.mxu2 %v4230_v36  ;;  %2389 = vmatpush.bf16.msrb.mxu0 %v3942_v41  ;;  %v3481_v36 = vld [vmem:[#allocation8 + $0x88] sm:$0xf]  ;;  %v3898_v41 = vor.u32 %v4810_v35, %v3897_v34  ;;  %v4846_v34 = vld [vmem:[#allocation8 + $0x4f4] sm:$0xf0] }
 0x107   :  { %2402 = vmatpush.bf16.msrb.mxu1 %v4070_v42  ;;  %v3753_v42 = vld [vmem:[#allocation8 + $0x2a8] sm:$0xf]  ;;  %v3482_v46 = vor.u32 %v4706_v37, %v3481_v36  ;;  %v4878_v36 = vld [vmem:[#allocation8 + $0x5f4] sm:$0xf0] }
 0x108   :  { %v3754_v56 = vor.u32 %v4774_v45, %v3753_v42  ;;  %v3545_v30 = vld [vmem:[#allocation8 + $0x108] sm:$0xf]  ;;  %v4790_v45 = vld [vmem:[#allocation8 + $0x334] sm:$0xf0] }
 0x109   :  { %2427 = vmatpush.bf16.msrb.mxu3 %v4342_v57  ;;  %v3882_v57 = vor.u32 %v4806_v51, %v3881_v48  ;;  %v4169_v35 = vld [vmem:[#allocation8 + $0x5e8] sm:$0xf]  ;;  %v4786_v59 = vld [vmem:[#allocation8 + $0x314] sm:$0xf0] }
 0x10a   :  { %2414 = vmatpush.bf16.msrb.mxu2 %v4214_v53  ;;  %2390 = vmatpush.bf16.msrb.mxu0 %v3926_v60  ;;  %v4702_v53 = vld [vmem:[#allocation8 + $0x74] sm:$0xf0]  ;;  %v3689_v38 = vld [vmem:[#allocation8 + $0x228] sm:$0xf] }
 0x10b   :  { %2403 = vmatpush.bf16.msrb.mxu1 %v4054_v61  ;;  %v3466_v60 = vor.u32 %v4702_v53, %v3465_v52  ;;  %v3594_v61 = vor.u32 %v4734_v55, %v3593_v54  ;;  %v3817_v42 = vld [vmem:[#allocation8 + $0x328] sm:$0xf]  ;;  %v3690_v51 = vor.u32 %v4758_v39, %v3689_v38  ;;  %v4842_v52 = vld [vmem:[#allocation8 + $0x4d4] sm:$0xf0] }
 0x10c   :  { %v4025_v48 = vld [vmem:[#allocation8 + $0x4c8] sm:$0xf]  ;;  %v4874_v54 = vld [vmem:[#allocation8 + $0x5d4] sm:$0xf0]  ;;  %v3818_v55 = vor.u32 %v4790_v45, %v3817_v42 }
 0x10d   :  { %2428 = vmatpush.bf16.msrb.mxu3 %v4326_v10  ;;  %2391 = vmatmul.bf16.vlgmr.msrb.gmra.mxu0 %v5376_v6  ;;  %v4766_v10 = vld [vmem:[#allocation8 + $0x274] sm:$0xf0]  ;;  %v4153_v53 = vld [vmem:[#allocation8 + $0x5c8] sm:$0xf]  ;;  %v4026_v62 = vor.u32 %v4842_v52, %v4025_v48 }
 0x10e   :  { %2435 = vmatpush.bf16.msra.mxu0 %v3530_v0  ;;  %2415 = vmatpush.bf16.msrb.mxu2 %v4198_v4  ;;  %v3449_v0 = vld [vmem:[#allocation8 + $0x48] sm:$0xf]  ;;  %v4730_v4 = vld [vmem:[#allocation8 + $0x154] sm:$0xf0]  ;;  %v3722_v20 = vor.u32 %v4766_v10, %v3721_v8  ;;  %v4154_v63 = vor.u32 %v4874_v54, %v4153_v53 }
 0x10f   :  { %2448 = vmatpush.bf16.msra.mxu1 %v3658_v1  ;;  %v4698_v1 = vld [vmem:[#allocation8 + $0x54] sm:$0xf0]  ;;  %v3578_v12 = vor.u32 %v4730_v4, %v3577_v3  ;;  %v3801_v58 = vld [vmem:[#allocation8 + $0x308] sm:$0xf] }
 0x110   :  { %2404 = vmatmul.bf16.vlgmr.msrb.gmra.mxu1 %v5379_v9  ;;  %v3450_v11 = vor.u32 %v4698_v1, %v3449_v0  ;;  %v4425_v0 = vld [vmem:[#allocation8 + $0x7e8] sm:$0xf]  ;;  %v4942_v1 = vld [vmem:[#allocation8 + $0x7f4] sm:$0xf0] }
 0x111   :  { %2429 = vmatpush.bf16.msrb.mxu3 %v4310_v27  ;;  %v4794_v27 = vld [vmem:[#allocation8 + $0x354] sm:$0xf0]  ;;  %v4009_v4 = vld [vmem:[#allocation8 + $0x4a8] sm:$0xf] }
 0x112   :  { %2436 = vmatpush.bf16.msra.mxu0 %v3514_v18  ;;  %2416 = vmatpush.bf16.msrb.mxu2 %v4182_v2  ;;  %v3561_v18 = vld [vmem:[#allocation8 + $0x128] sm:$0xf]  ;;  %v4762_v2 = vld [vmem:[#allocation8 + $0x254] sm:$0xf0]  ;;  %v3834_v37 = vor.u32 %v4794_v27, %v3833_v24 }
 0x113   :  { %2449 = vmatpush.bf16.msra.mxu1 %v3642_v19  ;;  %v4726_v19 = vld [vmem:[#allocation8 + $0x134] sm:$0xf0]  ;;  %v4137_v10 = vld [vmem:[#allocation8 + $0x5a8] sm:$0xf] }
 0x114   :  { %2430 = vmatmul.bf16.vlgmr.msrb.gmra.mxu3 %v5385_v44  ;;  %v3562_v26 = vor.u32 %v4726_v19, %v3561_v18  ;;  %v4281_v13 = vld [vmem:[#allocation8 + $0x6c8] sm:$0xf]  ;;  %v4906_v14 = vld [vmem:[#allocation8 + $0x6d4] sm:$0xf0] }
 0x115   :  { %2474 = vmatpush.bf16.msra.mxu3 %v3914_v29  ;;  %2417 = vmatmul.bf16.vlgmr.msrb.gmra.mxu2 %v5383_v50  ;;  %v4690_v29 = vld [vmem:[#allocation8 + $0x14] sm:$0xf0]  ;;  %v4409_v16 = vld [vmem:[#allocation8 + $0x7c8] sm:$0xf] }
 0x116   :  { %2461 = vmatpush.bf16.msra.mxu2 %v3786_v28  ;;  %2437 = vmatpush.bf16.msra.mxu0 %v3498_v32  ;;  %v3417_v28 = vld [vmem:[#allocation8 + $0x8] sm:$0xf]  ;;  %v4938_v18 = vld [vmem:[#allocation8 + $0x7d4] sm:$0xf0] }
 0x117   :  { %2450 = vmatpush.bf16.msra.mxu1 %v3626_v33  ;;  %v4041_v32 = vld [vmem:[#allocation8 + $0x4e8] sm:$0xf]  ;;  %v3706_v33 = vor.u32 %v4762_v2, %v3705_v23  ;;  %v4282_v23 = vor.u32 %v4906_v14, %v4281_v13  ;;  %v4866_v24 = vld [vmem:[#allocation8 + $0x594] sm:$0xf0] }
 0x118   :  { %v4121_v2 = vld [vmem:[#allocation8 + $0x588] sm:$0xf]  ;;  %v4902_v27 = vld [vmem:[#allocation8 + $0x6b4] sm:$0xf0] }
 0x119   :  { %2475 = vmatpush.bf16.msra.mxu3 %v3898_v41  ;;  %v3546_v41 = vor.u32 %v4722_v31, %v3545_v30  ;;  %v4934_v30 = vld [vmem:[#allocation8 + $0x7b4] sm:$0xf0]  ;;  %v4122_v31 = vor.u32 %v4866_v24, %v4121_v2  ;;  %v4249_v38 = vld [vmem:[#allocation8 + $0x688] sm:$0xf] }
 0x11a   :  { %2462 = vmatpush.bf16.msra.mxu2 %v3770_v40  ;;  %2438 = vmatpush.bf16.msra.mxu0 %v3482_v46  ;;  %v3418_v40 = vor.u32 %v4690_v29, %v3417_v28  ;;  %v4042_v46 = vor.u32 %v4846_v34, %v4041_v32  ;;  %v4393_v29 = vld [vmem:[#allocation8 + $0x7a8] sm:$0xf]  ;;  %v4898_v39 = vld [vmem:[#allocation8 + $0x694] sm:$0xf0] }
 0x11b   :  { %2451 = vmatpush.bf16.msra.mxu1 %v3610_v47  ;;  %v4170_v47 = vor.u32 %v4878_v36, %v4169_v35  ;;  %v3977_v32 = vld [vmem:[#allocation8 + $0x468] sm:$0xf]  ;;  %v4862_v36 = vld [vmem:[#allocation8 + $0x574] sm:$0xf0]  ;;  %v4250_v48 = vor.u32 %v4898_v39, %v4249_v38 }
 0x11c   :  { %v4105_v35 = vld [vmem:[#allocation8 + $0x568] sm:$0xf]  ;;  %v4930_v42 = vld [vmem:[#allocation8 + $0x794] sm:$0xf0] }
 0x11d   :  { %2476 = vmatpush.bf16.msra.mxu3 %v3882_v57  ;;  %v4754_v57 = vld [vmem:[#allocation8 + $0x214] sm:$0xf0]  ;;  %v4106_v45 = vor.u32 %v4862_v36, %v4105_v35  ;;  %v4233_v54 = vld [vmem:[#allocation8 + $0x668] sm:$0xf] }
 0x11e   :  { %2463 = vmatpush.bf16.msra.mxu2 %v3754_v56  ;;  %2439 = vmatpush.bf16.msra.mxu0 %v3466_v60  ;;  %v3673_v56 = vld [vmem:[#allocation8 + $0x208] sm:$0xf]  ;;  %v4858_v52 = vld [vmem:[#allocation8 + $0x554] sm:$0xf0] }
 0x11f   :  { %2452 = vmatpush.bf16.msra.mxu1 %v3594_v61  ;;  %v4297_v60 = vld [vmem:[#allocation8 + $0x6e8] sm:$0xf]  ;;  %v4910_v61 = vld [vmem:[#allocation8 + $0x6f4] sm:$0xf0]  ;;  %v3674_v3 = vor.u32 %v4754_v57, %v3673_v56 }
 0x120   :  { %v4298_v8 = vor.u32 %v4910_v61, %v4297_v60  ;;  %v4361_v57 = vld [vmem:[#allocation8 + $0x768] sm:$0xf]  ;;  %v4822_v61 = vld [vmem:[#allocation8 + $0x434] sm:$0xf0] }
 0x121   :  { %2477 = vmatpush.bf16.msra.mxu3 %v3866_v7  ;;  %v3802_v7 = vor.u32 %v4786_v59, %v3801_v58  ;;  %v4926_v58 = vld [vmem:[#allocation8 + $0x774] sm:$0xf0]  ;;  %v3945_v60 = vld [vmem:[#allocation8 + $0x428] sm:$0xf] }
 0x122   :  { %2464 = vmatpush.bf16.msra.mxu2 %v3738_v5  ;;  %2440 = vmatpush.bf16.msra.mxu0 %v3450_v11  ;;  %v4838_v5 = vld [vmem:[#allocation8 + $0x4b4] sm:$0xf0]  ;;  %v4057_v13 = vld [vmem:[#allocation8 + $0x508] sm:$0xf] }
 0x123   :  { %2453 = vmatpush.bf16.msra.mxu1 %v3578_v12  ;;  %v4870_v11 = vld [vmem:[#allocation8 + $0x5b4] sm:$0xf0]  ;;  %v4426_v12 = vor.u32 %v4942_v1, %v4425_v0  ;;  %v4010_v15 = vor.u32 %v4838_v5, %v4009_v4  ;;  %v4362_v1 = vor.u32 %v4926_v58, %v4361_v57  ;;  %v3946_v5 = vor.u32 %v4822_v61, %v3945_v60  ;;  %v4185_v36 = vld [vmem:[#allocation8 + $0x608] sm:$0xf]  ;;  %v4776_v58 = vld [vmem:[#allocation8 + $0x2cc] sm:$0xf] }
 0x124   :  { %v4138_v19 = vor.u32 %v4870_v11, %v4137_v10  ;;  %v4854_v0 = vld [vmem:[#allocation8 + $0x534] sm:$0xf0]  ;;  %v3929_v10 = vld [vmem:[#allocation8 + $0x408] sm:$0xf]  ;;  %v4808_v61 = vld [vmem:[#allocation8 + $0x3cc] sm:$0xf] }
 0x125   :  { %2478 = vmatpush.bf16.msra.mxu3 %v3850_v21  ;;  %v4834_v21 = vld [vmem:[#allocation8 + $0x494] sm:$0xf0]  ;;  %v4313_v38 = vld [vmem:[#allocation8 + $0x708] sm:$0xf] }
 0x126   :  { %2465 = vmatpush.bf16.msra.mxu2 %v3722_v20  ;;  %2441 = vmatpush.bf16.msra.mxu0 %v3434_v25  ;;  %v3993_v20 = vld [vmem:[#allocation8 + $0x488] sm:$0xf]  ;;  %v4410_v25 = vor.u32 %v4938_v18, %v4409_v16  ;;  %v4890_v4 = vld [vmem:[#allocation8 + $0x654] sm:$0xf0]  ;;  %v4716_v16 = vld [vmem:[#allocation8 + $0xec] sm:$0xf] }
 0x127   :  { %2454 = vmatpush.bf16.msra.mxu1 %v3562_v26  ;;  %v4265_v26 = vld [vmem:[#allocation8 + $0x6a8] sm:$0xf]  ;;  %v3994_v28 = vor.u32 %v4834_v21, %v3993_v20  ;;  %v4850_v14 = vld [vmem:[#allocation8 + $0x514] sm:$0xf0]  ;;  %v3531_v18 = vld [vmem:[#allocation8 + $0xf8] sm:$0xf0] }
 0x128   :  { %v4266_v34 = vor.u32 %v4902_v27, %v4265_v26  ;;  %v3659_v21 = vld [vmem:[#allocation8 + $0x1f8] sm:$0xf0]  ;;  %v4886_v2 = vld [vmem:[#allocation8 + $0x634] sm:$0xf0]  ;;  %v4058_v27 = vor.u32 %v4850_v14, %v4057_v13  ;;  %v4804_v14 = vld [vmem:[#allocation8 + $0x3ac] sm:$0xf] }
 0x129   :  { %2479 = vmatpush.bf16.msra.mxu3 %v3834_v37  ;;  %v4394_v37 = vor.u32 %v4934_v30, %v4393_v29  ;;  %v4918_v26 = vld [vmem:[#allocation8 + $0x734] sm:$0xf0]  ;;  %v4712_v29 = vld [vmem:[#allocation8 + $0xcc] sm:$0xf] }
 0x12a   :  { %2466 = vmatpush.bf16.msra.mxu2 %v3706_v33  ;;  %2442 = vmatpush.bf16.msra.mxu0 %v3418_v40  ;;  %v4830_v33 = vld [vmem:[#allocation8 + $0x474] sm:$0xf0] }
 0x12b   :  { %2455 = vmatpush.bf16.msra.mxu1 %v3546_v41  ;;  %v3978_v40 = vor.u32 %v4830_v33, %v3977_v32  ;;  %v4377_v41 = vld [vmem:[#allocation8 + $0x788] sm:$0xf]  ;;  %v3515_v32 = vld [vmem:[#allocation8 + $0xd8] sm:$0xf0]  ;;  %v4744_v33 = vld [vmem:[#allocation8 + $0x1cc] sm:$0xf] }
 0x12c   :  { %v4378_v53 = vor.u32 %v4930_v42, %v4377_v41  ;;  %v4914_v39 = vld [vmem:[#allocation8 + $0x714] sm:$0xf0]  ;;  %v3787_v41 = vld [vmem:[#allocation8 + $0x2f8] sm:$0xf0]  ;;  %v3518_v42 = vor.u32 %v4712_v29, %v3515_v32 }
 0x12d   :  { %2480 = vmatpush.bf16.msra.mxu3 %v3818_v55  ;;  %2443 = vmatmul.bf16.vlgmr.msra.gmra.mxu0 %v5360_v17  ;;  %v4894_v55 = vld [vmem:[#allocation8 + $0x674] sm:$0xf0] }
 0x12e   :  { %2487 = vmatpush.bf16.msrb.mxu0 %v4042_v46  ;;  %2467 = vmatpush.bf16.msra.mxu2 %v3690_v51  ;;  %v3961_v46 = vld [vmem:[#allocation8 + $0x448] sm:$0xf] }
 0x12f   :  { %2500 = vmatpush.bf16.msrb.mxu1 %v4170_v47  ;;  %v4826_v47 = vld [vmem:[#allocation8 + $0x454] sm:$0xf0]  ;;  %v4089_v51 = vld [vmem:[#allocation8 + $0x548] sm:$0xf] }
 0x130   :  { %2456 = vmatmul.bf16.vlgmr.msra.gmra.mxu1 %v5363_v22  ;;  %v3962_v56 = vor.u32 %v4826_v47, %v3961_v46  ;;  %v4090_v59 = vor.u32 %v4858_v52, %v4089_v51  ;;  %v3915_v46 = vld [vmem:[#allocation8 + $0x3f8] sm:$0xf0]  ;;  %v4708_v51 = vld [vmem:[#allocation8 + $0xac] sm:$0xf] }
 0x131   :  { %2481 = vmatpush.bf16.msra.mxu3 %v3802_v7  ;;  %v4345_v7 = vld [vmem:[#allocation8 + $0x748] sm:$0xf]  ;;  %v3499_v52 = vld [vmem:[#allocation8 + $0xb8] sm:$0xf0] }
 0x132   :  { %2488 = vmatpush.bf16.msrb.mxu0 %v4026_v62  ;;  %2468 = vmatpush.bf16.msra.mxu2 %v3674_v3  ;;  %v4234_v62 = vor.u32 %v4894_v55, %v4233_v54  ;;  %v4217_v3 = vld [vmem:[#allocation8 + $0x648] sm:$0xf]  ;;  %v4740_v55 = vld [vmem:[#allocation8 + $0x1ac] sm:$0xf]  ;;  %v3502_v60 = vor.u32 %v4708_v51, %v3499_v52  ;;  %v3563_v52 = vld [vmem:[#allocation8 + $0x138] sm:$0xf0] }
 0x133   :  { %2501 = vmatpush.bf16.msrb.mxu1 %v4154_v63  ;;  %v4073_v63 = vld [vmem:[#allocation8 + $0x528] sm:$0xf]  ;;  %v4724_v51 = vld [vmem:[#allocation8 + $0x12c] sm:$0xf] }
 0x134   :  { %2482 = vmatmul.bf16.vlgmr.msra.gmra.mxu3 %v5369_v49  ;;  %v4074_v11 = vor.u32 %v4854_v0, %v4073_v63  ;;  %v4704_v0 = vld [vmem:[#allocation8 + $0x8c] sm:$0xf] }
 0x135   :  { %2526 = vmatpush.bf16.msrb.mxu3 %v4426_v12  ;;  %2469 = vmatmul.bf16.vlgmr.msra.gmra.mxu2 %v5367_v43  ;;  %v4818_v12 = vld [vmem:[#allocation8 + $0x414] sm:$0xf0] }
 0x136   :  { %2513 = vmatpush.bf16.msrb.mxu2 %v4298_v8  ;;  %2489 = vmatpush.bf16.msrb.mxu0 %v4010_v15  ;;  %v4922_v8 = vld [vmem:[#allocation8 + $0x754] sm:$0xf0]  ;;  %v4218_v15 = vor.u32 %v4890_v4, %v4217_v3  ;;  %v3930_v24 = vor.u32 %v4818_v12, %v3929_v10  ;;  %v3755_v12 = vld [vmem:[#allocation8 + $0x2b8] sm:$0xf0] }
 0x137   :  { %2502 = vmatpush.bf16.msrb.mxu1 %v4138_v19  ;;  %v4748_v19 = vld [vmem:[#allocation8 + $0x1ec] sm:$0xf]  ;;  %v4346_v20 = vor.u32 %v4922_v8, %v4345_v7  ;;  %v3611_v7 = vld [vmem:[#allocation8 + $0x198] sm:$0xf0] }
 0x138   :  { %v3662_v30 = vor.u32 %v4748_v19, %v3659_v21  ;;  %v3467_v19 = vld [vmem:[#allocation8 + $0x78] sm:$0xf0]  ;;  %v4732_v21 = vld [vmem:[#allocation8 + $0x16c] sm:$0xf] }
 0x139   :  { %2527 = vmatpush.bf16.msrb.mxu3 %v4410_v25  ;;  %v4329_v25 = vld [vmem:[#allocation8 + $0x728] sm:$0xf] }
 0x13a   :  { %2514 = vmatpush.bf16.msrb.mxu2 %v4282_v23  ;;  %2490 = vmatpush.bf16.msrb.mxu0 %v3994_v28  ;;  %v4201_v23 = vld [vmem:[#allocation8 + $0x628] sm:$0xf]  ;;  %v3534_v28 = vor.u32 %v4716_v16, %v3531_v18  ;;  %v4330_v35 = vor.u32 %v4918_v26, %v4329_v25  ;;  %v4700_v18 = vld [vmem:[#allocation8 + $0x6c] sm:$0xf]  ;;  %v3739_v25 = vld [vmem:[#allocation8 + $0x298] sm:$0xf0] }
 0x13b   :  { %2503 = vmatpush.bf16.msrb.mxu1 %v4122_v31  ;;  %v4202_v31 = vor.u32 %v4886_v2, %v4201_v23  ;;  %v3595_v23 = vld [vmem:[#allocation8 + $0x178] sm:$0xf0]  ;;  %v3470_v26 = vor.u32 %v4700_v18, %v3467_v19 }
 0x13c   :  { %v3598_v29 = vor.u32 %v4732_v21, %v3595_v23  ;;  %v3819_v18 = vld [vmem:[#allocation8 + $0x338] sm:$0xf0]  ;;  %v4840_v21 = vld [vmem:[#allocation8 + $0x4cc] sm:$0xf] }
 0x13d   :  { %2528 = vmatpush.bf16.msrb.mxu3 %v4394_v37  ;;  %v4882_v37 = vld [vmem:[#allocation8 + $0x614] sm:$0xf0] }
 0x13e   :  { %2515 = vmatpush.bf16.msrb.mxu2 %v4266_v34  ;;  %2491 = vmatpush.bf16.msrb.mxu0 %v3978_v40  ;;  %v3643_v34 = vld [vmem:[#allocation8 + $0x1d8] sm:$0xf0]  ;;  %v4780_v40 = vld [vmem:[#allocation8 + $0x2ec] sm:$0xf] }
 0x13f   :  { %2504 = vmatpush.bf16.msrb.mxu1 %v4106_v45  ;;  %v4812_v45 = vld [vmem:[#allocation8 + $0x3ec] sm:$0xf]  ;;  %v3646_v47 = vor.u32 %v4744_v33, %v3643_v34  ;;  %v3790_v54 = vor.u32 %v4780_v40, %v3787_v41 }
 0x140   :  { %v3918_v57 = vor.u32 %v4812_v45, %v3915_v46  ;;  %v4728_v34 = vld [vmem:[#allocation8 + $0x14c] sm:$0xf] }
 0x141   :  { %2529 = vmatpush.bf16.msrb.mxu3 %v4378_v53  ;;  %v4314_v53 = vor.u32 %v4914_v39, %v4313_v38  ;;  %v4764_v38 = vld [vmem:[#allocation8 + $0x26c] sm:$0xf]  ;;  %v3723_v39 = vld [vmem:[#allocation8 + $0x278] sm:$0xf0] }
 0x142   :  { %2516 = vmatpush.bf16.msrb.mxu2 %v4250_v48  ;;  %2492 = vmatpush.bf16.msrb.mxu0 %v3962_v56  ;;  %v4186_v48 = vor.u32 %v4882_v37, %v4185_v36  ;;  %v3627_v56 = vld [vmem:[#allocation8 + $0x1b8] sm:$0xf0]  ;;  %v4796_v41 = vld [vmem:[#allocation8 + $0x36c] sm:$0xf] }
 0x143   :  { %2505 = vmatpush.bf16.msrb.mxu1 %v4090_v59  ;;  %v3771_v59 = vld [vmem:[#allocation8 + $0x2d8] sm:$0xf0]  ;;  %v3630_v63 = vor.u32 %v4740_v55, %v3627_v56  ;;  %v4692_v46 = vld [vmem:[#allocation8 + $0x2c] sm:$0xf] }
 0x144   :  { %v3774_v4 = vor.u32 %v4776_v58, %v3771_v59  ;;  %v4760_v55 = vld [vmem:[#allocation8 + $0x24c] sm:$0xf]  ;;  %v3707_v56 = vld [vmem:[#allocation8 + $0x258] sm:$0xf0] }
 0x145   :  { %2530 = vmatpush.bf16.msrb.mxu3 %v4362_v1  ;;  %v3483_v1 = vld [vmem:[#allocation8 + $0x98] sm:$0xf0]  ;;  %v4792_v59 = vld [vmem:[#allocation8 + $0x34c] sm:$0xf] }
 0x146   :  { %2517 = vmatpush.bf16.msrb.mxu2 %v4234_v62  ;;  %2493 = vmatpush.bf16.msrb.mxu0 %v3946_v5  ;;  %v3899_v62 = vld [vmem:[#allocation8 + $0x3d8] sm:$0xf0]  ;;  %v4736_v5 = vld [vmem:[#allocation8 + $0x18c] sm:$0xf]  ;;  %v3486_v13 = vor.u32 %v4704_v0, %v3483_v1 }
 0x147   :  { %2506 = vmatpush.bf16.msrb.mxu1 %v4074_v11  ;;  %v3902_v8 = vor.u32 %v4808_v61, %v3899_v62  ;;  %v4772_v11 = vld [vmem:[#allocation8 + $0x2ac] sm:$0xf]  ;;  %v3614_v16 = vor.u32 %v4736_v5, %v3611_v7  ;;  %v3566_v62 = vor.u32 %v4724_v51, %v3563_v52  ;;  %v3547_v1 = vld [vmem:[#allocation8 + $0x118] sm:$0xf0] }
 0x148   :  { %v4688_v61 = vld [vmem:[#allocation8 + $0xc] sm:$0xf]  ;;  %v4043_v7 = vld [vmem:[#allocation8 + $0x4f8] sm:$0xf0] }
 0x149   :  { %2531 = vmatpush.bf16.msrb.mxu3 %v4346_v20  ;;  %v5403_v3 = vpop.f32.mrf.mxu0  ;;  %v5405_v10 = vpop.f32.mrf.mxu1  ;;  %v3758_v20 = vor.u32 %v4772_v11, %v3755_v12  ;;  %v4720_v0 = vld [vmem:[#allocation8 + $0x10c] sm:$0xf]  ;;  %v4171_v12 = vld [vmem:[#allocation8 + $0x5f8] sm:$0xf0] }
 0x14a   :  { %2518 = vmatpush.bf16.msrb.mxu2 %v4218_v15  ;;  %2494 = vmatpush.bf16.msrb.mxu0 %v3930_v24  ;;  %v3883_v15 = vld [vmem:[#allocation8 + $0x3b8] sm:$0xf0]  ;;  %v4768_v24 = vld [vmem:[#allocation8 + $0x28c] sm:$0xf]  ;;  %v3550_v19 = vor.u32 %v4720_v0, %v3547_v1 }
 0x14b   :  { %2507 = vmatpush.bf16.msrb.mxu1 %v4058_v27  ;;  %v3886_v2 = vor.u32 %v4804_v14, %v3883_v15  ;;  %v4800_v27 = vld [vmem:[#allocation8 + $0x38c] sm:$0xf]  ;;  %v3742_v33 = vor.u32 %v4768_v24, %v3739_v25  ;;  %v3691_v14 = vld [vmem:[#allocation8 + $0x238] sm:$0xf0] }
 0x14c   :  { %v4844_v5 = vld [vmem:[#allocation8 + $0x4ec] sm:$0xf]  ;;  %v4027_v24 = vld [vmem:[#allocation8 + $0x4d8] sm:$0xf0] }
 0x14d   :  { %2532 = vmatpush.bf16.msrb.mxu3 %v4330_v35  ;;  %2495 = vmatmul.bf16.vlgmr.msrb.gmra.mxu0 %v5376_v6  ;;  %v3579_v35 = vld [vmem:[#allocation8 + $0x158] sm:$0xf0]  ;;  %v4872_v25 = vld [vmem:[#allocation8 + $0x5cc] sm:$0xf] }
 0x14e   :  { %2539 = vmatpush.bf16.msra.mxu0 %v3534_v28  ;;  %2519 = vmatpush.bf16.msrb.mxu2 %v4202_v31  ;;  %v3867_v28 = vld [vmem:[#allocation8 + $0x398] sm:$0xf0]  ;;  %v3582_v45 = vor.u32 %v4728_v34, %v3579_v35  ;;  %v4908_v34 = vld [vmem:[#allocation8 + $0x6ec] sm:$0xf] }
 0x14f   :  { %2552 = vmatpush.bf16.msra.mxu1 %v3662_v30  ;;  %v4696_v30 = vld [vmem:[#allocation8 + $0x4c] sm:$0xf]  ;;  %v3451_v31 = vld [vmem:[#allocation8 + $0x58] sm:$0xf0]  ;;  %v3870_v36 = vor.u32 %v4800_v27, %v3867_v28 }
 0x150   :  { %2508 = vmatmul.bf16.vlgmr.msrb.gmra.mxu1 %v5379_v9  ;;  %v3454_v40 = vor.u32 %v4696_v30, %v3451_v31  ;;  %v3675_v30 = vld [vmem:[#allocation8 + $0x218] sm:$0xf0]  ;;  %v4784_v31 = vld [vmem:[#allocation8 + $0x30c] sm:$0xf] }
 0x151   :  { %2533 = vmatpush.bf16.msrb.mxu3 %v4314_v53  ;;  %v2238_v32 = vpop.f32.mrf.mxu0  ;;  %v2251_v37 = vpop.f32.mrf.mxu1  ;;  %v4299_v35 = vld [vmem:[#allocation8 + $0x6f8] sm:$0xf0]  ;;  %v4904_v52 = vld [vmem:[#allocation8 + $0x6cc] sm:$0xf] }
 0x152   :  { %2540 = vmatpush.bf16.msra.mxu0 %v3518_v42  ;;  %2520 = vmatpush.bf16.msrb.mxu2 %v4186_v48  ;;  %v3851_v42 = vld [vmem:[#allocation8 + $0x378] sm:$0xf0]  ;;  %v3726_v48 = vor.u32 %v4764_v38, %v3723_v39  ;;  %v4940_v37 = vld [vmem:[#allocation8 + $0x7ec] sm:$0xf] }
 0x153   :  { %2553 = vmatpush.bf16.msra.mxu1 %v3646_v47  ;;  %v3435_v47 = vld [vmem:[#allocation8 + $0x38] sm:$0xf0]  ;;  %v4900_v1 = vld [vmem:[#allocation8 + $0x6ac] sm:$0xf] }
 0x154   :  { %2534 = vmatmul.bf16.vlgmr.msrb.gmra.mxu3 %v5385_v44  ;;  %v3438_v58 = vor.u32 %v4692_v46, %v3435_v47  ;;  %v4427_v38 = vld [vmem:[#allocation8 + $0x7f8] sm:$0xf0]  ;;  %v4302_v46 = vor.u32 %v4908_v34, %v4299_v35  ;;  %v4868_v47 = vld [vmem:[#allocation8 + $0x5ac] sm:$0xf] }
 0x155   :  { %2578 = vmatpush.bf16.msra.mxu3 %v3918_v57  ;;  %2521 = vmatmul.bf16.vlgmr.msrb.gmra.mxu2 %v5383_v50  ;;  %v4430_v51 = vor.u32 %v4940_v37, %v4427_v38  ;;  %v4924_v35 = vld [vmem:[#allocation8 + $0x76c] sm:$0xf] }
 0x156   :  { %2565 = vmatpush.bf16.msra.mxu2 %v3790_v54  ;;  %2541 = vmatpush.bf16.msra.mxu0 %v3502_v60  ;;  %v3854_v54 = vor.u32 %v4796_v41, %v3851_v42  ;;  %v3835_v60 = vld [vmem:[#allocation8 + $0x358] sm:$0xf0]  ;;  %v4836_v41 = vld [vmem:[#allocation8 + $0x4ac] sm:$0xf] }
 0x157   :  { %2554 = vmatpush.bf16.msra.mxu1 %v3630_v63  ;;  %v5411_v57 = vpop.f32.mrf.mxu3  ;;  %v3419_v63 = vld [vmem:[#allocation8 + $0x18] sm:$0xf0]  ;;  %v3838_v11 = vor.u32 %v4792_v59, %v3835_v60  ;;  %v4832_v60 = vld [vmem:[#allocation8 + $0x48c] sm:$0xf] }
 0x158   :  { %v5409_v53 = vpop.f32.mrf.mxu2  ;;  %v3422_v15 = vor.u32 %v4688_v61, %v3419_v63  ;;  %v4011_v42 = vld [vmem:[#allocation8 + $0x4b8] sm:$0xf0]  ;;  %v4820_v38 = vld [vmem:[#allocation8 + $0x42c] sm:$0xf] }
 0x159   :  { %2579 = vmatpush.bf16.msra.mxu3 %v3902_v8  ;;  %v4876_v8 = vld [vmem:[#allocation8 + $0x5ec] sm:$0xf]  ;;  %v3995_v61 = vld [vmem:[#allocation8 + $0x498] sm:$0xf0] }
 0x15a   :  { %2566 = vmatpush.bf16.msra.mxu2 %v3774_v4  ;;  %2542 = vmatpush.bf16.msra.mxu0 %v3486_v13  ;;  %v3710_v4 = vor.u32 %v4760_v55, %v3707_v56  ;;  %v4756_v13 = vld [vmem:[#allocation8 + $0x22c] sm:$0xf]  ;;  %v4174_v23 = vor.u32 %v4876_v8, %v4171_v12  ;;  %v4014_v55 = vor.u32 %v4836_v41, %v4011_v42  ;;  %v4123_v63 = vld [vmem:[#allocation8 + $0x598] sm:$0xf0] }
 0x15b   :  { %2555 = vmatpush.bf16.msra.mxu1 %v3614_v16  ;;  %v4788_v16 = vld [vmem:[#allocation8 + $0x32c] sm:$0xf]  ;;  %v4075_v42 = vld [vmem:[#allocation8 + $0x538] sm:$0xf0] }
 0x15c   :  { %v3822_v28 = vor.u32 %v4788_v16, %v3819_v18  ;;  %v4936_v56 = vld [vmem:[#allocation8 + $0x7cc] sm:$0xf]  ;;  %v4107_v18 = vld [vmem:[#allocation8 + $0x578] sm:$0xf0] }
 0x15d   :  { %2580 = vmatpush.bf16.msra.mxu3 %v3886_v2  ;;  %v3694_v2 = vor.u32 %v4756_v13, %v3691_v14  ;;  %v4932_v8 = vld [vmem:[#allocation8 + $0x7ac] sm:$0xf]  ;;  %v3979_v14 = vld [vmem:[#allocation8 + $0x478] sm:$0xf0] }
 0x15e   :  { %2567 = vmatpush.bf16.msra.mxu2 %v3758_v20  ;;  %2543 = vmatpush.bf16.msra.mxu0 %v3470_v26  ;;  %v4046_v20 = vor.u32 %v4844_v5, %v4043_v7  ;;  %v4155_v26 = vld [vmem:[#allocation8 + $0x5d8] sm:$0xf0]  ;;  %v3998_v7 = vor.u32 %v4832_v60, %v3995_v61  ;;  %v4828_v13 = vld [vmem:[#allocation8 + $0x46c] sm:$0xf] }
 0x15f   :  { %2556 = vmatpush.bf16.msra.mxu1 %v3598_v29  ;;  %v4752_v29 = vld [vmem:[#allocation8 + $0x20c] sm:$0xf]  ;;  %v2277_v32 = vpop.f32.mrf.mxu3  ;;  %v4158_v39 = vor.u32 %v4872_v25, %v4155_v26  ;;  %v3931_v60 = vld [vmem:[#allocation8 + $0x418] sm:$0xf0] }
 0x160   :  { %v2264_v27 = vpop.f32.mrf.mxu2  ;;  %v4860_v16 = vld [vmem:[#allocation8 + $0x56c] sm:$0xf]  ;;  %v4235_v32 = vld [vmem:[#allocation8 + $0x678] sm:$0xf0] }
 0x161   :  { %2581 = vmatpush.bf16.msra.mxu3 %v3870_v36  ;;  %v4030_v36 = vor.u32 %v4840_v21, %v4027_v24  ;;  %v3982_v21 = vor.u32 %v4828_v13, %v3979_v14  ;;  %v4110_v24 = vor.u32 %v4860_v16, %v4107_v18  ;;  %v4824_v25 = vld [vmem:[#allocation8 + $0x44c] sm:$0xf]  ;;  %v4331_v13 = vld [vmem:[#allocation8 + $0x738] sm:$0xf0] }
 0x162   :  { %2568 = vmatpush.bf16.msra.mxu2 %v3742_v33  ;;  %2544 = vmatpush.bf16.msra.mxu0 %v3454_v40  ;;  %v3803_v33 = vld [vmem:[#allocation8 + $0x318] sm:$0xf0]  ;;  %v3678_v40 = vor.u32 %v4752_v29, %v3675_v30  ;;  %v4856_v27 = vld [vmem:[#allocation8 + $0x54c] sm:$0xf] }
 0x163   :  { %2557 = vmatpush.bf16.msra.mxu1 %v3582_v45  ;;  %v3806_v45 = vor.u32 %v4784_v31, %v3803_v33  ;;  %v4892_v31 = vld [vmem:[#allocation8 + $0x66c] sm:$0xf] }
 0x164   :  { %v4852_v41 = vld [vmem:[#allocation8 + $0x52c] sm:$0xf] }
 0x165   :  { %2582 = vmatpush.bf16.msra.mxu3 %v3854_v54  ;;  %v4283_v54 = vld [vmem:[#allocation8 + $0x6d8] sm:$0xf0] }
 0x166   :  { %2569 = vmatpush.bf16.msra.mxu2 %v3726_v48  ;;  %2545 = vmatpush.bf16.msra.mxu0 %v3438_v58  ;;  %v4139_v48 = vld [vmem:[#allocation8 + $0x5b8] sm:$0xf0] }
 0x167   :  { %2558 = vmatpush.bf16.msra.mxu1 %v3566_v62  ;;  %v4411_v58 = vld [vmem:[#allocation8 + $0x7d8] sm:$0xf0]  ;;  %v4142_v59 = vor.u32 %v4868_v47, %v4139_v48  ;;  %v4864_v62 = vld [vmem:[#allocation8 + $0x58c] sm:$0xf] }
 0x168   :  { %v4126_v12 = vor.u32 %v4864_v62, %v4123_v63  ;;  %v4888_v47 = vld [vmem:[#allocation8 + $0x64c] sm:$0xf]  ;;  %v4219_v48 = vld [vmem:[#allocation8 + $0x658] sm:$0xf0] }
 0x169   :  { %2583 = vmatpush.bf16.msra.mxu3 %v3838_v11  ;;  %v5415_v0 = vpop.f32.mrf.mxu0  ;;  %v5418_v5 = vpop.f32.mrf.mxu1  ;;  %v4395_v11 = vld [vmem:[#allocation8 + $0x7b8] sm:$0xf0]  ;;  %v4848_v62 = vld [vmem:[#allocation8 + $0x50c] sm:$0xf] }
 0x16a   :  { %2570 = vmatpush.bf16.msra.mxu2 %v3710_v4  ;;  %2546 = vmatpush.bf16.msra.mxu0 %v3422_v15  ;;  %v4267_v4 = vld [vmem:[#allocation8 + $0x6b8] sm:$0xf0] }
 0x16b   :  { %2559 = vmatpush.bf16.msra.mxu1 %v3550_v19  ;;  %v4270_v15 = vor.u32 %v4900_v1, %v4267_v4  ;;  %v4398_v19 = vor.u32 %v4932_v8, %v4395_v11  ;;  %v4059_v63 = vld [vmem:[#allocation8 + $0x518] sm:$0xf0]  ;;  %v4884_v4 = vld [vmem:[#allocation8 + $0x62c] sm:$0xf] }
 0x16c   :  { %v4062_v14 = vor.u32 %v4848_v62, %v4059_v63 }
 0x16d   :  { %2584 = vmatpush.bf16.msra.mxu3 %v3822_v28  ;;  %2547 = vmatmul.bf16.vlgmr.msra.gmra.mxu0 %v5360_v17  ;;  %v4286_v17 = vor.u32 %v4904_v52, %v4283_v54  ;;  %v4091_v28 = vld [vmem:[#allocation8 + $0x558] sm:$0xf0]  ;;  %v4920_v54 = vld [vmem:[#allocation8 + $0x74c] sm:$0xf] }
 0x16e   :  { %2591 = vmatpush.bf16.msrb.mxu0 %v4046_v20  ;;  %2571 = vmatpush.bf16.msra.mxu2 %v3694_v2  ;;  %v4896_v20 = vld [vmem:[#allocation8 + $0x68c] sm:$0xf]  ;;  %v4379_v2 = vld [vmem:[#allocation8 + $0x798] sm:$0xf0]  ;;  %v4094_v37 = vor.u32 %v4856_v27, %v4091_v28  ;;  %v4957_v28 = vld [vmem:[#allocation11 + $0x70] sm:$0xff] }
 0x16f   :  { %2604 = vmatpush.bf16.msrb.mxu1 %v4174_v23  ;;  %v4928_v23 = vld [vmem:[#allocation8 + $0x78c] sm:$0xf] }
 0x170   :  { %2560 = vmatmul.bf16.vlgmr.msra.gmra.mxu1 %v5363_v22  ;;  %v4414_v22 = vor.u32 %v4936_v56, %v4411_v58  ;;  %v4382_v30 = vor.u32 %v4928_v23, %v4379_v2  ;;  %v4078_v58 = vor.u32 %v4852_v41, %v4075_v42  ;;  %v4912_v2 = vld [vmem:[#allocation8 + $0x70c] sm:$0xf]  ;;  %v4946_v42 = vld [vmem:[#allocation11 + $0x18] sm:$0xff] }
 0x171   :  { %2585 = vmatpush.bf16.msra.mxu3 %v3806_v45  ;;  %v2290_v29 = vpop.f32.mrf.mxu0  ;;  %v2303_v33 = vpop.f32.mrf.mxu1  ;;  %v5421_v45 = vld [vmem:[#allocation10] sm:$0xf] }
 0x172   :  { %2592 = vmatpush.bf16.msrb.mxu0 %v4030_v36  ;;  %2572 = vmatpush.bf16.msra.mxu2 %v3678_v40  ;;  %v4363_v36 = vld [vmem:[#allocation8 + $0x778] sm:$0xf0]  ;;  %v4238_v40 = vor.u32 %v4892_v31, %v4235_v32  ;;  %v939_v61 = vperm.slane %v5421_v45, 0  ;;  %v940_v27 = vperm.slane %v5421_v45, 1  ;;  %v4948_v32 = vld [vmem:[#allocation11 + $0x28] sm:$0xff] }
 0x173   :  { %2605 = vmatpush.bf16.msrb.mxu1 %v4158_v39  ;;  %v3947_v39 = vld [vmem:[#allocation8 + $0x438] sm:$0xf0] }
 0x174   :  { %2586 = vmatmul.bf16.vlgmr.msra.gmra.mxu3 %v5369_v49  ;;  %v3963_v49 = vld [vmem:[#allocation8 + $0x458] sm:$0xf0]  ;;  %v3950_v52 = vor.u32 %v4820_v38, %v3947_v39  ;;  %v2237_v16 = vadd.f32 %v5403_v3, %v939_v61  ;;  %v4952_v61 = vld [vmem:[#allocation11 + $0x48] sm:$0xff] }
 0x175   :  { %2630 = vmatpush.bf16.msrb.mxu3 %v4430_v51  ;;  %2573 = vmatmul.bf16.vlgmr.msra.gmra.mxu2 %v5367_v43  ;;  %v4251_v43 = vld [vmem:[#allocation8 + $0x698] sm:$0xf0]  ;;  %v3966_v34 = vor.u32 %v4824_v25, %v3963_v49  ;;  %v4949_v49 = vld [vmem:[#allocation11 + $0x30] sm:$0xff] }
 0x176   :  { %2617 = vmatpush.bf16.msrb.mxu2 %v4302_v46  ;;  %2593 = vmatpush.bf16.msrb.mxu0 %v4014_v55  ;;  %v4254_v26 = vor.u32 %v4896_v20, %v4251_v43  ;;  %v4366_v46 = vor.u32 %v4924_v35, %v4363_v36  ;;  %v4347_v55 = vld [vmem:[#allocation8 + $0x758] sm:$0xf0]  ;;  %v4880_v43 = vld [vmem:[#allocation8 + $0x60c] sm:$0xf] }
 0x177   :  { %2606 = vmatpush.bf16.msrb.mxu1 %v4142_v59  ;;  %v5423_v51 = vpop.f32.mrf.mxu2  ;;  %v5425_v56 = vpop.f32.mrf.mxu3  ;;  %v4816_v59 = vld [vmem:[#allocation8 + $0x40c] sm:$0xf]  ;;  %v4350_v1 = vor.u32 %v4920_v54, %v4347_v55  ;;  %v4953_v54 = vld [vmem:[#allocation11 + $0x50] sm:$0xff] }
 0x178   :  { %v3934_v11 = vor.u32 %v4816_v59, %v3931_v60  ;;  %v4944_v59 = vld [vmem:[#allocation11 + $0x8] sm:$0xff] }
 0x179   :  { %2631 = vmatpush.bf16.msrb.mxu3 %v4414_v22  ;;  %v2340_v22 = vpop.f32.mrf.mxu0  ;;  %v2353_v8 = vpop.f32.mrf.mxu1 }
 0x17a   :  { %2618 = vmatpush.bf16.msrb.mxu2 %v4286_v17  ;;  %2594 = vmatpush.bf16.msrb.mxu0 %v3998_v7  ;;  %v4222_v17 = vor.u32 %v4888_v47, %v4219_v48  ;;  %v4203_v7 = vld [vmem:[#allocation8 + $0x638] sm:$0xf0] }
 0x17b   :  { %2607 = vmatpush.bf16.msrb.mxu1 %v4126_v12  ;;  %v4916_v12 = vld [vmem:[#allocation8 + $0x72c] sm:$0xf]  ;;  %v4206_v18 = vor.u32 %v4884_v4, %v4203_v7 }
 0x17c   :  { %v4334_v20 = vor.u32 %v4916_v12, %v4331_v13  ;;  %v4965_v12 = vld [vmem:[#allocation11 + $0xb0] sm:$0xff]  ;;  %v4964_v13 = vld [vmem:[#allocation11 + $0xa8] sm:$0xff] }
 0x17d   :  { %2632 = vmatpush.bf16.msrb.mxu3 %v4398_v19  ;;  %v4958_v19 = vld [vmem:[#allocation11 + $0x78] sm:$0xff] }
 0x17e   :  { %2619 = vmatpush.bf16.msrb.mxu2 %v4270_v15  ;;  %2595 = vmatpush.bf16.msrb.mxu0 %v3982_v21  ;;  %v4950_v15 = vld [vmem:[#allocation11 + $0x38] sm:$0xff] }
 0x17f   :  { %2608 = vmatpush.bf16.msrb.mxu1 %v4110_v24  ;;  %v4187_v21 = vld [vmem:[#allocation8 + $0x618] sm:$0xf0]  ;;  %v2316_v23 = vpop.f32.mrf.mxu2  ;;  %v2329_v25 = vpop.f32.mrf.mxu3 }
 0x180   :  { %v4315_v24 = vld [vmem:[#allocation8 + $0x718] sm:$0xf0]  ;;  %v4190_v3 = vor.u32 %v4880_v43, %v4187_v21  ;;  %v4961_v43 = vld [vmem:[#allocation11 + $0x90] sm:$0xff] }
 0x181   :  { %2633 = vmatpush.bf16.msrb.mxu3 %v4382_v30  ;;  %v2342_v29 = vpop.f32.mrf.mxu0  ;;  %v4318_v30 = vor.u32 %v4912_v2, %v4315_v24  ;;  %v2355_v31 = vpop.f32.mrf.mxu1  ;;  %v4960_v2 = vld [vmem:[#allocation11 + $0x88] sm:$0xff] }
 0x182   :  { %2620 = vmatpush.bf16.msrb.mxu2 %v4254_v26  ;;  %2596 = vmatpush.bf16.msrb.mxu0 %v3966_v34  ;;  %v2250_v26 = vadd.f32 %v5405_v10, %v2237_v16  ;;  %v2341_v34 = vadd.f32 %v2340_v22, %v940_v27  ;;  %v4956_v10 = vld [vmem:[#allocation11 + $0x68] sm:$0xff]  ;;  %v4943_v22 = vld [vmem:[#allocation11] sm:$0xff] }
 0x183   :  { %2609 = vmatpush.bf16.msrb.mxu1 %v4094_v37  ;;  %v4963_v16 = vld [vmem:[#allocation11 + $0xa0] sm:$0xff] }
 0x184   :  { %v2263_v33 = vadd.f32 %v5409_v53, %v2250_v26  ;;  %v2354_v38 = vadd.f32 %v2353_v8, %v2341_v34  ;;  %v941_v26 = vperm.slane %v5421_v45, 2 }
 0x185   :  { %2634 = vmatpush.bf16.msrb.mxu3 %v4366_v46  ;;  %v4954_v46 = vld [vmem:[#allocation11 + $0x58] sm:$0xff] }
 0x186   :  { %2621 = vmatpush.bf16.msrb.mxu2 %v4238_v40  ;;  %2597 = vmatpush.bf16.msrb.mxu0 %v3950_v52  ;;  %v2276_v37 = vadd.f32 %v5411_v57, %v2263_v33  ;;  %v4945_v57 = vld [vmem:[#allocation11 + $0x10] sm:$0xff] }
 0x187   :  { %2610 = vmatpush.bf16.msrb.mxu1 %v4078_v58  ;;  %v2366_v35 = vpop.f32.mrf.mxu2  ;;  %v2379_v36 = vpop.f32.mrf.mxu3 }
 0x188   :  { %v2289_v53 = vadd.f32 %v5415_v0, %v2276_v37  ;;  %v2367_v39 = vadd.f32 %v2366_v35, %v2354_v38  ;;  %v4974_v37 = vld [vmem:[#allocation11 + $0xf8] sm:$0xff] }
 0x189   :  { %2635 = vmatpush.bf16.msrb.mxu3 %v4350_v1 }
 0x18a   :  { %2622 = vmatpush.bf16.msrb.mxu2 %v4222_v17  ;;  %2598 = vmatpush.bf16.msrb.mxu0 %v3934_v11  ;;  %v2392_v40 = vpop.f32.mrf.mxu0  ;;  %v2380_v47 = vadd.f32 %v2379_v36, %v2367_v39 }
 0x18b   :  { %2611 = vmatpush.bf16.msrb.mxu1 %v4062_v14 }
 0x18c   :  { %v2393_v55 = vadd.f32 %v2392_v40, %v2380_v47  ;;  %v4973_v40 = vld [vmem:[#allocation11 + $0xf0] sm:$0xff]  ;;  %v4971_v47 = vld [vmem:[#allocation11 + $0xe0] sm:$0xff] }
 0x18d   :  { %2636 = vmatpush.bf16.msrb.mxu3 %v4334_v20  ;;  %2599 = vmatmul.bf16.vlgmr.msrb.gmra.mxu0 %v5376_v6  ;;  %v4947_v6 = vld [vmem:[#allocation11 + $0x20] sm:$0xff]  ;;  %v2405_v41 = vpop.f32.mrf.mxu1 }
 0x18e   :  { %2911 = vmatpush.bf16.msra.mxu0 %v4950_v15  ;;  %2623 = vmatpush.bf16.msrb.mxu2 %v4206_v18  ;;  %v2406_v17 = vadd.f32 %v2405_v41, %v2393_v55 }
 0x18f   :  { %2924 = vmatpush.bf16.msra.mxu1 %v4958_v19  ;;  %v2368_v48 = vpop.f32.mrf.mxu2  ;;  %v2381_v52 = vpop.f32.mrf.mxu3  ;;  %v4962_v19 = vld [vmem:[#allocation11 + $0x98] sm:$0xff] }
 0x190   :  { %2612 = vmatmul.bf16.vlgmr.msrb.gmra.mxu1 %v5379_v9  ;;  %v4955_v9 = vld [vmem:[#allocation11 + $0x60] sm:$0xff]  ;;  %v4970_v52 = vld [vmem:[#allocation11 + $0xd8] sm:$0xff] }
 0x191   :  { %2637 = vmatpush.bf16.msrb.mxu3 %v4318_v30 }
 0x192   :  { %2912 = vmatpush.bf16.msra.mxu0 %v4949_v49  ;;  %2624 = vmatpush.bf16.msrb.mxu2 %v4190_v3  ;;  %v2394_v0 = vpop.f32.mrf.mxu0  ;;  %v4959_v49 = vld [vmem:[#allocation11 + $0x80] sm:$0xff] }
 0x193   :  { %2925 = vmatpush.bf16.msra.mxu1 %v4957_v28  ;;  %v4968_v0 = vld [vmem:[#allocation11 + $0xc8] sm:$0xff] }
 0x194   :  { %2638 = vmatmul.bf16.vlgmr.msrb.gmra.mxu3 %v5385_v44 }
 0x195   :  { %2625 = vmatmul.bf16.vlgmr.msrb.gmra.mxu2 %v5383_v50  ;;  %v2302_v50 = vadd.f32 %v5418_v5, %v2289_v53  ;;  %v2407_v58 = vpop.f32.mrf.mxu1  ;;  %v4966_v5 = vld [vmem:[#allocation11 + $0xb8] sm:$0xff]  ;;  %2950 = vmatpush.bf16.msra.mxu3 %v4974_v37  ;;  %v4985_v37 = vld [vmem:[#allocation14 + $0x10] sm:$0xff] }
 0x196   :  { %2913 = vmatpush.bf16.msra.mxu0 %v4948_v32  ;;  %2937 = vmatpush.bf16.msra.mxu2 %v4966_v5 }
 0x197   :  { %2926 = vmatpush.bf16.msra.mxu1 %v4956_v10  ;;  %v2315_v44 = vadd.f32 %v5423_v51, %v2302_v50  ;;  %v2431_v63 = vpop.f32.mrf.mxu3  ;;  %v4951_v51 = vld [vmem:[#allocation11 + $0x40] sm:$0xff] }
 0x198   :  { %v2418_v62 = vpop.f32.mrf.mxu2 }
 0x199   :  { %v2328_v60 = vadd.f32 %v5425_v56, %v2315_v44  ;;  %v2419_v4 = vadd.f32 %v2418_v62, %v2406_v17  ;;  %2951 = vmatpush.bf16.msra.mxu3 %v4973_v40  ;;  %v4969_v44 = vld [vmem:[#allocation11 + $0xd0] sm:$0xff] }
 0x19a   :  { %2914 = vmatpush.bf16.msra.mxu0 %v4947_v6  ;;  %2938 = vmatpush.bf16.msra.mxu2 %v4965_v12 }
 0x19b   :  { %2927 = vmatpush.bf16.msra.mxu1 %v4955_v9  ;;  %v2643_v1 = vmax.f32 %v2328_v60, 0.0  ;;  %v2432_v7 = vadd.f32 %v2431_v63, %v2419_v4  ;;  %v4967_v60 = vld [vmem:[#allocation11 + $0xc0] sm:$0xff] }
 0x19d   :  { %v2647_v8 = vpack.c.bf16 %v2643_v1, %v2643_v1  ;;  %v2644_v11 = vmax.f32 %v2432_v7, 0.0 }
 0x19e   :  { %2915 = vmatpush.bf16.msra.mxu0 %v4946_v42  ;;  %2939 = vmatpush.bf16.msra.mxu2 %v4964_v13 }
 0x19f   :  { %2928 = vmatpush.bf16.msra.mxu1 %v4954_v46  ;;  %v2648_v56 = vpack.c.bf16 %v2644_v11, %v2644_v11  ;;  %v2433_v15 = vpop.f32.mrf.mxu3  ;;  %v4972_v46 = vld [vmem:[#allocation11 + $0xe8] sm:$0xff] }
 0x1a0   :  { %v2420_v14 = vpop.f32.mrf.mxu2  ;;  %2952 = vmatpush.bf16.msra.mxu3 %v4972_v46  ;;  %v4983_v46 = vld [vmem:[#allocation14] sm:$0xff] }
 0x1a2   :  { %2916 = vmatpush.bf16.msra.mxu0 %v4945_v57  ;;  %2940 = vmatpush.bf16.msra.mxu2 %v4963_v16 }
 0x1a3   :  { %2929 = vmatpush.bf16.msra.mxu1 %v4953_v54 }
 0x1a4   :  { %2953 = vmatpush.bf16.msra.mxu3 %v4971_v47 }
 0x1a6   :  { %2917 = vmatpush.bf16.msra.mxu0 %v4944_v59  ;;  %2941 = vmatpush.bf16.msra.mxu2 %v4962_v19 }
 0x1a7   :  { %2930 = vmatpush.bf16.msra.mxu1 %v4952_v61  ;;  %v942_v61 = vperm.slane %v5421_v45, 3 }
 0x1a8   :  { %2954 = vmatpush.bf16.msra.mxu3 %v4970_v52 }
 0x1aa   :  { %2918 = vmatpush.bf16.msra.mxu0 %v4943_v22  ;;  %v2444_v18 = vpop.f32.mrf.mxu0  ;;  %2942 = vmatpush.bf16.msra.mxu2 %v4961_v43 }
 0x1ab   :  { %2931 = vmatpush.bf16.msra.mxu1 %v4951_v51  ;;  %v2445_v28 = vadd.f32 %v2444_v18, %v941_v26  ;;  %v4981_v26 = vld [vmem:[#allocation13 + $0x30] sm:$0xff] }
 0x1ac   :  { %2955 = vmatpush.bf16.msra.mxu3 %v4969_v44 }
 0x1ad   :  { %2919 = vmatmul.bf16.vlgmr.msra.gmra.mxu0 %v2647_v8  ;;  %v2457_v20 = vpop.f32.mrf.mxu1 }
 0x1ae   :  { %2932 = vmatmul.bf16.vlgmr.msra.gmra.mxu1 %v2648_v56  ;;  %2943 = vmatpush.bf16.msra.mxu2 %v4960_v2  ;;  %v2458_v29 = vadd.f32 %v2457_v20, %v2445_v28  ;;  %v5006_v20 = vld [vmem:[%s5461_s6] ss:$0 sm:$0xff]  ;;  %v4978_v28 = vld [vmem:[#allocation13 + $0x18] sm:$0xff] }
 0x1b0   :  { %2956 = vmatpush.bf16.msra.mxu3 %v4968_v0 }
 0x1b2   :  { %v2446_v21 = vpop.f32.mrf.mxu0  ;;  %2944 = vmatpush.bf16.msra.mxu2 %v4959_v49  ;;  %v4982_v49 = vld [vmem:[#allocation13 + $0x38] sm:$0xff] }
 0x1b3   :  { %3033 = vmatpush.bf16.msrb.mxu0 %v4982_v49 }
 0x1b4   :  { %2957 = vmatpush.bf16.msra.mxu3 %v4967_v60 }
 0x1b5   :  { %v2459_v23 = vpop.f32.mrf.mxu1 }
 0x1b7   :  { %v2483_v25 = vpop.f32.mrf.mxu3  ;;  %3034 = vmatpush.bf16.msrb.mxu0 %v4981_v26 }
 0x1b8   :  { %v2470_v24 = vpop.f32.mrf.mxu2 }
 0x1b9   :  { %v2471_v31 = vadd.f32 %v2470_v24, %v2458_v29  ;;  %v4977_v29 = vld [vmem:[#allocation13 + $0x10] sm:$0xff] }
 0x1bb   :  { %v2484_v33 = vadd.f32 %v2483_v25, %v2471_v31 }
 0x1bf   :  { %v2485_v3 = vpop.f32.mrf.mxu3 }
 0x1c0   :  { %v2472_v27 = vpop.f32.mrf.mxu2  ;;  %v4979_v3 = vld [vmem:[#allocation13 + $0x20] sm:$0xff] }
 0x1c1   :  { %v4980_v27 = vld [vmem:[#allocation13 + $0x28] sm:$0xff] }
 0x1c2   :  { %3035 = vmatpush.bf16.msrb.mxu0 %v4980_v27 }
 0x1c6   :  { %3036 = vmatpush.bf16.msrb.mxu0 %v4979_v3 }
 0x1ca   :  { %v2496_v30 = vpop.f32.mrf.mxu0  ;;  %3037 = vmatpush.bf16.msrb.mxu0 %v4978_v28 }
 0x1cb   :  { %v2497_v34 = vadd.f32 %v2496_v30, %v2484_v33  ;;  %v4975_v33 = vld [vmem:[#allocation13] sm:$0xff] }
 0x1cd   :  { %v2509_v32 = vpop.f32.mrf.mxu1 }
 0x1ce   :  { %v2510_v36 = vadd.f32 %v2509_v32, %v2497_v34  ;;  %3038 = vmatpush.bf16.msrb.mxu0 %v4977_v29  ;;  %v4976_v32 = vld [vmem:[#allocation13 + $0x8] sm:$0xff]  ;;  %v4990_v34 = vld [vmem:[#allocation14 + $0x38] sm:$0xff] }
 0x1cf   :  { %3116 = vmatpush.bf16.msrb.mxu1 %v4990_v34 }
 0x1d2   :  { %v2498_v10 = vpop.f32.mrf.mxu0  ;;  %3039 = vmatpush.bf16.msrb.mxu0 %v4976_v32 }
 0x1d3   :  { %v4989_v10 = vld [vmem:[#allocation14 + $0x30] sm:$0xff] }
 0x1d4   :  { %3117 = vmatpush.bf16.msrb.mxu1 %v4989_v10 }
 0x1d5   :  { %v2511_v35 = vpop.f32.mrf.mxu1 }
 0x1d6   :  { %3040 = vmatpush.bf16.msrb.mxu0 %v4975_v33  ;;  %v4988_v35 = vld [vmem:[#allocation14 + $0x28] sm:$0xff] }
 0x1d7   :  { %v2535_v9 = vpop.f32.mrf.mxu3 }
 0x1d8   :  { %v2522_v6 = vpop.f32.mrf.mxu2  ;;  %3118 = vmatpush.bf16.msrb.mxu1 %v4988_v35 }
 0x1d9   :  { %v2523_v38 = vadd.f32 %v2522_v6, %v2510_v36  ;;  %v4987_v36 = vld [vmem:[#allocation14 + $0x20] sm:$0xff]  ;;  %v4986_v6 = vld [vmem:[#allocation14 + $0x18] sm:$0xff] }
 0x1db   :  { %v2536_v53 = vadd.f32 %v2535_v9, %v2523_v38 }
 0x1dc   :  { %3119 = vmatpush.bf16.msrb.mxu1 %v4987_v36 }
 0x1dd   :  { %v2645_v39 = vmax.f32 %v2536_v53, 0.0 }
 0x1df   :  { %v2649_v41 = vpack.c.bf16 %v2645_v39, %v2645_v39  ;;  %v2537_v50 = vpop.f32.mrf.mxu3 }
 0x1e0   :  { %v2524_v42 = vpop.f32.mrf.mxu2  ;;  %3120 = vmatpush.bf16.msrb.mxu1 %v4986_v6  ;;  %v5007_v50 = vld [vmem:[%s5463_s8] ss:$0 sm:$0xff] }
 0x1e1   :  { %2945 = vmatmul.bf16.vlgmr.msra.gmra.mxu2 %v2649_v41  ;;  %v4984_v42 = vld [vmem:[#allocation14 + $0x8] sm:$0xff] }
 0x1e4   :  { %3121 = vmatpush.bf16.msrb.mxu1 %v4985_v37 }
 0x1e8   :  { %3122 = vmatpush.bf16.msrb.mxu1 %v4984_v42 }
 0x1ea   :  { %v2548_v48 = vpop.f32.mrf.mxu0 }
 0x1eb   :  { %v2549_v62 = vadd.f32 %v2548_v48, %v942_v61 }
 0x1ec   :  { %3123 = vmatpush.bf16.msrb.mxu1 %v4983_v46 }
 0x1ed   :  { %v2561_v57 = vpop.f32.mrf.mxu1 }
 0x1ee   :  { %v2562_v63 = vadd.f32 %v2561_v57, %v2549_v62 }
 0x1f2   :  { %v2550_v54 = vpop.f32.mrf.mxu0 }
 0x1f3   :  { %v5008_v54 = vld [vmem:[%s5465_s10] ss:$0 sm:$0xff] }
 0x1f5   :  { %v2563_v55 = vpop.f32.mrf.mxu1 }
 0x1f7   :  { %v2587_v59 = vpop.f32.mrf.mxu3 }
 0x1f8   :  { %v2574_v58 = vpop.f32.mrf.mxu2 }
 0x1f9   :  { %v2575_v1 = vadd.f32 %v2574_v58, %v2562_v63 }
 0x1fb   :  { %v2588_v51 = vadd.f32 %v2587_v59, %v2575_v1 }
 0x1ff   :  { %v2589_v5 = vpop.f32.mrf.mxu3 }
 0x200   :  { %v2576_v17 = vpop.f32.mrf.mxu2 }
 0x20a   :  { %v2600_v22 = vpop.f32.mrf.mxu0 }
 0x20b   :  { %v2601_v7 = vadd.f32 %v2600_v22, %v2588_v51 }
 0x20d   :  { %v2613_v4 = vpop.f32.mrf.mxu1 }
 0x20e   :  { %v2614_v12 = vadd.f32 %v2613_v4, %v2601_v7 }
 0x212   :  { %v2602_v8 = vpop.f32.mrf.mxu0 }
 0x215   :  { %v2615_v11 = vpop.f32.mrf.mxu1 }
 0x217   :  { %v2639_v14 = vpop.f32.mrf.mxu3 }
 0x218   :  { %v2626_v56 = vpop.f32.mrf.mxu2 }
 0x219   :  { %v2627_v13 = vadd.f32 %v2626_v56, %v2614_v12 }
 0x21b   :  { %v2640_v15 = vadd.f32 %v2639_v14, %v2627_v13 }
 0x21d   :  { %v2646_v16 = vmax.f32 %v2640_v15, 0.0 }
 0x21f   :  { %v2650_v18 = vpack.c.bf16 %v2646_v16, %v2646_v16  ;;  %v2641_v45 = vpop.f32.mrf.mxu3 }
 0x220   :  { %v2628_v19 = vpop.f32.mrf.mxu2 }
 0x221   :  { %2958 = vmatmul.bf16.vlgmr.msra.gmra.mxu3 %v2650_v18 }
 0x22a   :  { %v2920_v43 = vpop.f32.mrf.mxu0 }
 0x22b   :  { %v2921_v21 = vadd.f32 %v5006_v20, %v2920_v43  ;;  %v2933_v23 = vpop.f32.mrf.mxu1 }
 0x22d   :  { %v2934_v2 = vadd.f32 %v2933_v23, %v2921_v21 }
 0x232   :  { %v2922_v24 = vpop.f32.mrf.mxu0 }
 0x233   :  { %v2935_v25 = vpop.f32.mrf.mxu1 }
 0x264   :  { %v2946_v30 = vpop.f32.mrf.mxu2 }
 0x265   :  { %v2947_v38 = vadd.f32 %v2946_v30, %v2934_v2 }
 0x26c   :  { %v2948_v31 = vpop.f32.mrf.mxu2 }
 0x2a4   :  { %v2959_v9 = vpop.f32.mrf.mxu3 }
 0x2a5   :  { %v2960_v53 = vadd.f32 %v2959_v9, %v2947_v38 }
 0x2a7   :  { %v2963_v39 = vmax.f32 %v2960_v53, 0.0 }
 0x2a9   :  { %v2964_v40 = vpack.c.bf16 %v2963_v39, %v2963_v39 }
 0x2ab   :  { %3041 = vmatmul.bf16.vlgmr.msrb.gmra.mxu0 %v2964_v40 }
 0x2ac   :  { %v2961_v41 = vpop.f32.mrf.mxu3 }
 0x328   :  { %v3042_v47 = vpop.f32.mrf.mxu0 }
 0x329   :  { %v3043_v48 = vadd.f32 %v5007_v50, %v3042_v47 }
 0x32b   :  { %v3046_v52 = vmax.f32 %v3043_v48, 0.0 }
 0x32d   :  { %v3047_v57 = vpack.c.bf16 %v3046_v52, %v3046_v52 }
 0x32f   :  { %3124 = vmatmul.bf16.vlgmr.msrb.gmra.mxu1 %v3047_v57 }
 0x330   :  { %v3044_v44 = vpop.f32.mrf.mxu0 }
 0x3ac   :  { %v3125_v55 = vpop.f32.mrf.mxu1 }
 0x3ad   :  { %v3126_v0 = vadd.f32 %v5008_v54, %v3125_v55 }
 0x3af   :  { %3129 = vst [vmem:[#allocation16] sm:$0xff] %v3126_v0 }
 0x3b0   :  { %3140 = dma.vmem_to_hbm [thread:$0]  %s3136_s21, 128, %s3138_s5, [#allocation4]  }
 0x3b4   :  { %v3127_v58 = vpop.f32.mrf.mxu1 }
 0x3b5   :  { %5235 = dma.done.wait [#allocation4], 128  }
 0x3b6   :  { %5236 = vsyncadd [#allocation4], 4294967168 }
 0x3b7   :  { %3145 = vsyncpa [#allocation3], 1 }
 0x3b8   :  { %3146 = vsyncpa [#allocation6], 1 }
 0x3b9   :  { %3147 = vsyncpa [#allocation9], 1 }
 0x3ba   :  { %3148 = vsyncpa [#allocation12], 1 }
 0x3bb   :  { %3149 = vsyncpa [#allocation15], 1 }
 0x3bc   :  { %3150 = vsyncpa [#allocation4], 1 }

</bundles_post_ra>
